<compile_context>
chip_gen: v7x
topology: tpu7x:2x2x1
jax: 0.10.0
libtpu: 0.0.40
codegen_flags: <defaults>
</compile_context>

<pallas_src>
import jax
import jax.numpy as jnp
from jax.experimental import pallas as pl
from jax.experimental.pallas import tpu as pltpu

# --- small synthetic config (matches module structure, reduced sizes) ---
B = 2            # batch
S = 8            # sequence length (n_dec_seq)
D_HIDN = 32      # d_hidn
N_HEAD = 4       # n_head
D_HEAD = 8       # d_head
D_FF = 64        # d_ff
N_LAYER = 2      # n_layer
VOCAB = 32       # n_dec_vocab
I_PAD = 0
LN_EPS = 1e-12
NEG_INF = -1e9

HD = N_HEAD * D_HEAD          # n_head * d_head (= D_HIDN here)
BS = B * S                    # flattened token axis (rows of x)
GS = N_HEAD * B * S           # flattened (head, batch, seq) attention axis

# packed small-parameter slab layout: one (8, 128) f32 tile per layer
_PRM_ROWS = 8
_PRM_LANES = 128
# rows: 0 b_qkv(3*HD) | 1 b_o(D) | 2 ln1_g(D) | 3 ln1_b(D) | 4 b_ff1(D_FF)
#       5 b_ff2(D)    | 6 ln3_g(D) | 7 ln3_b(D)


def _layer_norm(x, gamma, beta, eps):
    # x: (BS, D) f32; gamma/beta: (1, D) f32
    mean = jnp.mean(x, axis=-1, keepdims=True)
    var = jnp.mean((x - mean) ** 2, axis=-1, keepdims=True)
    return (x - mean) * jax.lax.rsqrt(var + eps) * gamma + beta


def decoder_stack_kernel(x_ref, mask_ref, wqkv_ref, wo_ref, w1_ref, w2_ref,
                         prm_ref, out_ref, prob_ref):
    x = x_ref[...]                     # (BS, D) f32, resident for the whole stack
    mask = mask_ref[...]               # (GS, GS) f32 additive block-diagonal mask

    for layer in range(N_LAYER):       # statically unrolled; all weights VMEM-resident
        prm = prm_ref[layer]           # (8, 128) f32, one load per layer
        b_qkv = prm[0:1, 0:3 * HD]
        b_o = prm[1:2, 0:D_HIDN]
        g1 = prm[2:3, 0:D_HIDN]
        be1 = prm[3:4, 0:D_HIDN]
        b_f1 = prm[4:5, 0:D_FF]
        b_f2 = prm[5:6, 0:D_HIDN]
        g3 = prm[6:7, 0:D_HIDN]
        be3 = prm[7:8, 0:D_HIDN]

        # --- fused QKV projection; 1/sqrt(d_head) already folded into W_Q / b_Q ---
        qkv = jnp.dot(x.astype(jnp.bfloat16), wqkv_ref[layer],
                      preferred_element_type=jnp.float32) + b_qkv   # (BS, 3*HD) f32
        qkv = qkv.astype(jnp.bfloat16)

        def heads(off):
            # (BS, HD) columns (h, d) -> (GS, D_HEAD) rows ordered (h, b, s):
            # static lane slices + one sublane concat (no transpose, no per-head matmul).
            return jnp.concatenate(
                [qkv[:, off + h * D_HEAD: off + (h + 1) * D_HEAD]
                 for h in range(N_HEAD)], axis=0)

        q_bd = heads(0)                 # (GS, Dh) bf16
        k_bd = heads(HD)
        v_bd = heads(2 * HD)

        # --- block-diagonal attention: all heads & batches in ONE MXU pass each ---
        scores = jax.lax.dot_general(
            q_bd, k_bd, (((1,), (1,)), ((), ())),
            preferred_element_type=jnp.float32)                     # (GS, GS) f32
        # additive mask removes cross-(head,batch) blocks + causal + key-pad entries
        scores = scores + mask

        m = jnp.max(scores, axis=-1, keepdims=True)
        e = jnp.exp(scores - m)
        probs = e * pl.reciprocal(jnp.sum(e, axis=-1, keepdims=True), approx=True)
        prob_ref[layer] = probs          # dense 64-lane store; diag blocks sliced in wrapper

        ctx = jnp.dot(probs.astype(jnp.bfloat16), v_bd,
                      preferred_element_type=jnp.float32)           # (GS, Dh) f32

        # merge heads back to (BS, HD): row blocks -> lane blocks, column order (h, d)
        context = jnp.concatenate(
            [ctx[h * BS:(h + 1) * BS, :] for h in range(N_HEAD)], axis=1)

        attn_out = jnp.dot(context.astype(jnp.bfloat16), wo_ref[layer],
                           preferred_element_type=jnp.float32) + b_o
        # dropout layers -> identity (eval semantics)
        h1 = _layer_norm(x + attn_out, g1, be1, LN_EPS)

        # --- position-wise FFN (Conv1d kernel_size=1 == Linear over hidden axis) ---
        # TODO(synk): PyTorch F.gelu is exact erf-GELU; tanh approximation used for Mosaic.
        ff = jax.nn.gelu(
            jnp.dot(h1.astype(jnp.bfloat16), w1_ref[layer],
                    preferred_element_type=jnp.float32) + b_f1,
            approximate=True)
        ff = jnp.dot(ff.astype(jnp.bfloat16), w2_ref[layer],
                     preferred_element_type=jnp.float32) + b_f2

        x = _layer_norm(h1 + ff, g3, be3, LN_EPS)

    out_ref[...] = x


def _make_decoder_call():
    vmem = pltpu.MemorySpace.VMEM
    return pl.pallas_call(
        decoder_stack_kernel,
        out_shape=(jax.ShapeDtypeStruct((BS, D_HIDN), jnp.float32),
                   jax.ShapeDtypeStruct((N_LAYER, GS, GS), jnp.float32)),
        # grid-less call: everything fits VMEM at this size, no per-step overhead.
        in_specs=[pl.BlockSpec(memory_space=vmem)] * 7,
        out_specs=(pl.BlockSpec(memory_space=vmem),
                   pl.BlockSpec(memory_space=vmem)),
    )


_decoder_call = _make_decoder_call()


def _pack_small(b_qkv, b_o, g1, be1, b_f1, b_f2, g3, be3):
    rows = []
    for vec in (b_qkv, b_o, g1, be1, b_f1, b_f2, g3, be3):
        rows.append(jnp.zeros((_PRM_LANES,), jnp.float32).at[: vec.shape[0]].set(vec))
    return jnp.stack(rows)                                          # (8, 128)


def init_params(key):
    key, k_emb, k_pos = jax.random.split(key, 3)
    params = {
        "dec_emb": 0.02 * jax.random.normal(k_emb, (VOCAB, D_HIDN), jnp.float32),
        "pos_emb": 0.02 * jax.random.normal(k_pos, (VOCAB, D_HIDN), jnp.float32),
    }
    scale = 1.0 / (D_HEAD ** 0.5)
    wqkv, wo, w1, w2, prm = [], [], [], [], []
    for _ in range(N_LAYER):
        key, kq, kk, kv, ko, k1, k2 = jax.random.split(key, 7)
        w_q = 0.02 * jax.random.normal(kq, (D_HIDN, HD), jnp.float32)
        w_k = 0.02 * jax.random.normal(kk, (D_HIDN, HD), jnp.float32)
        w_v = 0.02 * jax.random.normal(kv, (D_HIDN, HD), jnp.float32)
        b_q = jnp.zeros((HD,), jnp.float32)
        b_k = jnp.zeros((HD,), jnp.float32)
        b_v = jnp.zeros((HD,), jnp.float32)
        # fold 1/sqrt(d_head) into the query projection (weights AND bias)
        wqkv.append(jnp.concatenate([w_q * scale, w_k, w_v], axis=1))   # (D, 3*HD)
        wo.append(0.02 * jax.random.normal(ko, (HD, D_HIDN), jnp.float32))
        w1.append(0.02 * jax.random.normal(k1, (D_HIDN, D_FF), jnp.float32))
        w2.append(0.02 * jax.random.normal(k2, (D_FF, D_HIDN), jnp.float32))
        prm.append(_pack_small(
            b_qkv=jnp.concatenate([b_q * scale, b_k, b_v]),
            b_o=jnp.zeros((D_HIDN,), jnp.float32),
            g1=jnp.ones((D_HIDN,), jnp.float32),
            be1=jnp.zeros((D_HIDN,), jnp.float32),
            b_f1=jnp.zeros((D_FF,), jnp.float32),
            b_f2=jnp.zeros((D_HIDN,), jnp.float32),
            g3=jnp.ones((D_HIDN,), jnp.float32),
            be3=jnp.zeros((D_HIDN,), jnp.float32)))
    # bf16 matmul operands (f32 accumulation inside the kernel)
    params["wqkv"] = jnp.stack(wqkv).astype(jnp.bfloat16)            # (L, D, 3*HD)
    params["wo"] = jnp.stack(wo).astype(jnp.bfloat16)                # (L, HD, D)
    params["w1"] = jnp.stack(w1).astype(jnp.bfloat16)                # (L, D, D_FF)
    params["w2"] = jnp.stack(w2).astype(jnp.bfloat16)                # (L, D_FF, D)
    params["small"] = jnp.stack(prm)                                 # (L, 8, 128) f32
    return params


def decoder_forward(dec_inputs, params):
    bsz, ssz = dec_inputs.shape
    # positions = arange(S) + 1, zeroed on pad tokens
    positions = jnp.broadcast_to(
        jnp.arange(ssz, dtype=dec_inputs.dtype)[None, :] + 1, (bsz, ssz))
    positions = jnp.where(dec_inputs == I_PAD, 0, positions)

    x = params["dec_emb"][dec_inputs] + params["pos_emb"][positions]  # (B, S, D) f32

    # Block-diagonal ADDITIVE mask over (head, batch) groups. Row/col index layout
    # matches the kernel's head concat: r = h*(B*S) + b*S + s.
    gsz = N_HEAD * bsz * ssz
    idx = jnp.arange(gsz)
    pos = idx % ssz
    bat = (idx // ssz) % bsz
    grp = idx // ssz
    key_tok = dec_inputs[bat, pos]                                    # (gsz,)
    allowed = (grp[:, None] == grp[None, :]) \
        & (pos[None, :] <= pos[:, None]) \
        & (key_tok != I_PAD)[None, :]
    mask_add = jnp.where(allowed, 0.0, NEG_INF).astype(jnp.float32)   # (gsz, gsz)

    out_flat, probs_full = _decoder_call(
        x.reshape(bsz * ssz, D_HIDN).astype(jnp.float32), mask_add,
        params["wqkv"], params["wo"], params["w1"], params["w2"], params["small"])

    dec_outputs = out_flat.reshape(bsz, ssz, D_HIDN)

    # extract the per-(head, batch) diagonal SxS blocks -> (L, B, H, S, S)
    g = N_HEAD * bsz
    pb = probs_full.reshape(N_LAYER, g, ssz, g, ssz)
    pb = jnp.diagonal(pb, axis1=1, axis2=3)           # (L, S, S, G)
    pb = jnp.moveaxis(pb, -1, 1)                      # (L, G, S, S), G ordered (h, b)
    pb = pb.reshape(N_LAYER, N_HEAD, bsz, ssz, ssz)
    pb = jnp.swapaxes(pb, 1, 2)                       # (L, B, H, S, S)
    return dec_outputs, [pb[l] for l in range(N_LAYER)]


if __name__ == "__main__":
    key = jax.random.PRNGKey(0)
    key, k_tok, k_par = jax.random.split(key, 3)
    # tokens drawn from [1, VOCAB) so no pad tokens (avoids the fully-masked-row
    # degenerate case, where torch's uniform-softmax fallback differs slightly)
    dec_inputs = jax.random.randint(k_tok, (B, S), 1, VOCAB, dtype=jnp.int32)
    params = init_params(k_par)

    dec_outputs, attn_probs = decoder_forward(dec_inputs, params)
    dec_outputs = jax.block_until_ready(dec_outputs)
    for p in attn_probs:
        jax.block_until_ready(p)

    assert dec_outputs.shape == (B, S, D_HIDN)
    assert len(attn_probs) == N_LAYER
    assert attn_probs[0].shape == (B, N_HEAD, S, S)
    print("KERNEL_OK")
</pallas_src>

<mosaic_0001>
module attributes {stable_mosaic.version = 11 : i64} {
  func.func @decoder_stack_kernel(%arg0: memref<16x32xf32, #tpu.memory_space<vmem>>, %arg1: memref<64x64xf32, #tpu.memory_space<vmem>>, %arg2: memref<2x32x96xbf16, #tpu.memory_space<vmem>>, %arg3: memref<2x32x32xbf16, #tpu.memory_space<vmem>>, %arg4: memref<2x32x64xbf16, #tpu.memory_space<vmem>>, %arg5: memref<2x64x32xbf16, #tpu.memory_space<vmem>>, %arg6: memref<2x8x128xf32, #tpu.memory_space<vmem>>, %arg7: memref<16x32xf32, #tpu.memory_space<vmem>>, %arg8: memref<2x64x64xf32, #tpu.memory_space<vmem>>) attributes {dimension_semantics = [], scalar_prefetch = 0 : i64, scratch_operands = 0 : i64, tpu.core_type = #tpu.core_type<tc>} {
    %c0 = arith.constant 0 : index
    %c0_0 = arith.constant 0 : index
    %0 = vector.load %arg0[%c0, %c0_0] : memref<16x32xf32, #tpu.memory_space<vmem>>, vector<16x32xf32>
    %c0_1 = arith.constant 0 : index
    %c0_2 = arith.constant 0 : index
    %1 = vector.load %arg1[%c0_1, %c0_2] : memref<64x64xf32, #tpu.memory_space<vmem>>, vector<64x64xf32>
    %c0_3 = arith.constant 0 : index
    %c0_4 = arith.constant 0 : index
    %c0_5 = arith.constant 0 : index
    %2 = vector.load %arg6[%c0_3, %c0_4, %c0_5] : memref<2x8x128xf32, #tpu.memory_space<vmem>>, vector<1x8x128xf32>
    %3 = vector.shape_cast %2 : vector<1x8x128xf32> to vector<8x128xf32>
    %4 = vector.extract_strided_slice %3 {offsets = [0, 0], sizes = [1, 96], strides = [1, 1]} : vector<8x128xf32> to vector<1x96xf32>
    %5 = vector.extract_strided_slice %3 {offsets = [1, 0], sizes = [1, 32], strides = [1, 1]} : vector<8x128xf32> to vector<1x32xf32>
    %6 = vector.extract_strided_slice %3 {offsets = [2, 0], sizes = [1, 32], strides = [1, 1]} : vector<8x128xf32> to vector<1x32xf32>
    %7 = vector.extract_strided_slice %3 {offsets = [3, 0], sizes = [1, 32], strides = [1, 1]} : vector<8x128xf32> to vector<1x32xf32>
    %8 = vector.extract_strided_slice %3 {offsets = [4, 0], sizes = [1, 64], strides = [1, 1]} : vector<8x128xf32> to vector<1x64xf32>
    %9 = vector.extract_strided_slice %3 {offsets = [5, 0], sizes = [1, 32], strides = [1, 1]} : vector<8x128xf32> to vector<1x32xf32>
    %10 = vector.extract_strided_slice %3 {offsets = [6, 0], sizes = [1, 32], strides = [1, 1]} : vector<8x128xf32> to vector<1x32xf32>
    %11 = vector.extract_strided_slice %3 {offsets = [7, 0], sizes = [1, 32], strides = [1, 1]} : vector<8x128xf32> to vector<1x32xf32>
    %12 = arith.truncf %0 : vector<16x32xf32> to vector<16x32xbf16>
    %c0_6 = arith.constant 0 : index
    %c0_7 = arith.constant 0 : index
    %c0_8 = arith.constant 0 : index
    %13 = vector.load %arg2[%c0_6, %c0_7, %c0_8] : memref<2x32x96xbf16, #tpu.memory_space<vmem>>, vector<1x32x96xbf16>
    %14 = vector.shape_cast %13 : vector<1x32x96xbf16> to vector<32x96xbf16>
    %cst = arith.constant dense<0.000000e+00> : vector<16x96xf32>
    %15 = tpu.matmul %12, %14, %cst {dimension_numbers = #tpu.dot_dimension_numbers<[1], [0], [0], [1], [0, 0, 1, 1], [], []>} : vector<16x32xbf16>, vector<32x96xbf16>, vector<16x96xf32> -> vector<16x96xf32>
    %16 = vector.broadcast %4 : vector<1x96xf32> to vector<16x96xf32>
    %17 = arith.addf %15, %16 : vector<16x96xf32>
    %18 = arith.truncf %17 : vector<16x96xf32> to vector<16x96xbf16>
    %19 = vector.extract_strided_slice %18 {offsets = [0, 0], sizes = [16, 8], strides = [1, 1]} : vector<16x96xbf16> to vector<16x8xbf16>
    %20 = vector.extract_strided_slice %18 {offsets = [0, 8], sizes = [16, 8], strides = [1, 1]} : vector<16x96xbf16> to vector<16x8xbf16>
    %21 = vector.extract_strided_slice %18 {offsets = [0, 16], sizes = [16, 8], strides = [1, 1]} : vector<16x96xbf16> to vector<16x8xbf16>
    %22 = vector.extract_strided_slice %18 {offsets = [0, 24], sizes = [16, 8], strides = [1, 1]} : vector<16x96xbf16> to vector<16x8xbf16>
    %23 = tpu.concatenate %19, %20, %21, %22 in 0 : vector<16x8xbf16>, vector<16x8xbf16>, vector<16x8xbf16>, vector<16x8xbf16> -> vector<64x8xbf16>
    %24 = vector.extract_strided_slice %18 {offsets = [0, 32], sizes = [16, 8], strides = [1, 1]} : vector<16x96xbf16> to vector<16x8xbf16>
    %25 = vector.extract_strided_slice %18 {offsets = [0, 40], sizes = [16, 8], strides = [1, 1]} : vector<16x96xbf16> to vector<16x8xbf16>
    %26 = vector.extract_strided_slice %18 {offsets = [0, 48], sizes = [16, 8], strides = [1, 1]} : vector<16x96xbf16> to vector<16x8xbf16>
    %27 = vector.extract_strided_slice %18 {offsets = [0, 56], sizes = [16, 8], strides = [1, 1]} : vector<16x96xbf16> to vector<16x8xbf16>
    %28 = tpu.concatenate %24, %25, %26, %27 in 0 : vector<16x8xbf16>, vector<16x8xbf16>, vector<16x8xbf16>, vector<16x8xbf16> -> vector<64x8xbf16>
    %29 = vector.extract_strided_slice %18 {offsets = [0, 64], sizes = [16, 8], strides = [1, 1]} : vector<16x96xbf16> to vector<16x8xbf16>
    %30 = vector.extract_strided_slice %18 {offsets = [0, 72], sizes = [16, 8], strides = [1, 1]} : vector<16x96xbf16> to vector<16x8xbf16>
    %31 = vector.extract_strided_slice %18 {offsets = [0, 80], sizes = [16, 8], strides = [1, 1]} : vector<16x96xbf16> to vector<16x8xbf16>
    %32 = vector.extract_strided_slice %18 {offsets = [0, 88], sizes = [16, 8], strides = [1, 1]} : vector<16x96xbf16> to vector<16x8xbf16>
    %33 = tpu.concatenate %29, %30, %31, %32 in 0 : vector<16x8xbf16>, vector<16x8xbf16>, vector<16x8xbf16>, vector<16x8xbf16> -> vector<64x8xbf16>
    %cst_9 = arith.constant dense<0.000000e+00> : vector<64x64xf32>
    %34 = tpu.matmul %23, %28, %cst_9 {dimension_numbers = #tpu.dot_dimension_numbers<[1], [1], [0], [0], [0, 0, 1, 0], [], []>} : vector<64x8xbf16>, vector<64x8xbf16>, vector<64x64xf32> -> vector<64x64xf32>
    %35 = arith.addf %34, %1 : vector<64x64xf32>
    %cst_10 = arith.constant dense<0xFF800000> : vector<64xf32>
    %36 = vector.multi_reduction <maximumf>, %35, %cst_10 [1] : vector<64x64xf32> to vector<64xf32>
    %37 = vector.shape_cast %36 : vector<64xf32> to vector<64x1xf32>
    %38 = vector.broadcast %37 : vector<64x1xf32> to vector<64x64xf32>
    %39 = arith.subf %35, %38 : vector<64x64xf32>
    %40 = math.exp %39 : vector<64x64xf32>
    %cst_11 = arith.constant dense<0.000000e+00> : vector<64xf32>
    %41 = vector.multi_reduction <add>, %40, %cst_11 [1] : vector<64x64xf32> to vector<64xf32>
    %42 = vector.shape_cast %41 : vector<64xf32> to vector<64x1xf32>
    %43 = tpu.reciprocal %42 {approx = true} : vector<64x1xf32> -> vector<64x1xf32>
    %44 = vector.broadcast %43 : vector<64x1xf32> to vector<64x64xf32>
    %45 = arith.mulf %40, %44 : vector<64x64xf32>
    %c0_12 = arith.constant 0 : index
    %c0_13 = arith.constant 0 : index
    %c0_14 = arith.constant 0 : index
    %46 = vector.load %arg8[%c0_12, %c0_13, %c0_14] : memref<2x64x64xf32, #tpu.memory_space<vmem>>, vector<1x64x64xf32>
    %47 = vector.shape_cast %46 : vector<1x64x64xf32> to vector<64x64xf32>
    %48 = vector.shape_cast %45 : vector<64x64xf32> to vector<1x64x64xf32>
    tpu.vector_store %arg8[%c0_12, %c0_13, %c0_14], %48 {strides = array<i32>} : memref<2x64x64xf32, #tpu.memory_space<vmem>>, vector<1x64x64xf32>,
    %49 = arith.truncf %45 : vector<64x64xf32> to vector<64x64xbf16>
    %cst_15 = arith.constant dense<0.000000e+00> : vector<64x8xf32>
    %50 = tpu.matmul %49, %33, %cst_15 {dimension_numbers = #tpu.dot_dimension_numbers<[1], [0], [0], [1], [0, 0, 1, 1], [], []>} : vector<64x64xbf16>, vector<64x8xbf16>, vector<64x8xf32> -> vector<64x8xf32>
    %51 = vector.extract_strided_slice %50 {offsets = [0, 0], sizes = [16, 8], strides = [1, 1]} : vector<64x8xf32> to vector<16x8xf32>
    %52 = vector.extract_strided_slice %50 {offsets = [16, 0], sizes = [16, 8], strides = [1, 1]} : vector<64x8xf32> to vector<16x8xf32>
    %53 = vector.extract_strided_slice %50 {offsets = [32, 0], sizes = [16, 8], strides = [1, 1]} : vector<64x8xf32> to vector<16x8xf32>
    %54 = vector.extract_strided_slice %50 {offsets = [48, 0], sizes = [16, 8], strides = [1, 1]} : vector<64x8xf32> to vector<16x8xf32>
    %55 = tpu.concatenate %51, %52, %53, %54 in 1 : vector<16x8xf32>, vector<16x8xf32>, vector<16x8xf32>, vector<16x8xf32> -> vector<16x32xf32>
    %56 = arith.truncf %55 : vector<16x32xf32> to vector<16x32xbf16>
    %c0_16 = arith.constant 0 : index
    %c0_17 = arith.constant 0 : index
    %c0_18 = arith.constant 0 : index
    %57 = vector.load %arg3[%c0_16, %c0_17, %c0_18] : memref<2x32x32xbf16, #tpu.memory_space<vmem>>, vector<1x32x32xbf16>
    %58 = vector.shape_cast %57 : vector<1x32x32xbf16> to vector<32x32xbf16>
    %cst_19 = arith.constant dense<0.000000e+00> : vector<16x32xf32>
    %59 = tpu.matmul %56, %58, %cst_19 {dimension_numbers = #tpu.dot_dimension_numbers<[1], [0], [0], [1], [0, 0, 1, 1], [], []>} : vector<16x32xbf16>, vector<32x32xbf16>, vector<16x32xf32> -> vector<16x32xf32>
    %60 = vector.broadcast %5 : vector<1x32xf32> to vector<16x32xf32>
    %61 = arith.addf %59, %60 : vector<16x32xf32>
    %62 = arith.addf %0, %61 : vector<16x32xf32>
    %cst_20 = arith.constant dense<0.000000e+00> : vector<16xf32>
    %63 = vector.multi_reduction <add>, %62, %cst_20 [1] : vector<16x32xf32> to vector<16xf32>
    %64 = vector.shape_cast %63 : vector<16xf32> to vector<16x1xf32>
    %cst_21 = arith.constant 3.200000e+01 : f32
    %65 = vector.broadcast %cst_21 : f32 to vector<16x1xf32>
    %66 = arith.divf %64, %65 : vector<16x1xf32>
    %67 = vector.broadcast %66 : vector<16x1xf32> to vector<16x32xf32>
    %68 = arith.subf %62, %67 : vector<16x32xf32>
    %69 = arith.mulf %68, %68 : vector<16x32xf32>
    %cst_22 = arith.constant dense<0.000000e+00> : vector<16xf32>
    %70 = vector.multi_reduction <add>, %69, %cst_22 [1] : vector<16x32xf32> to vector<16xf32>
    %71 = vector.shape_cast %70 : vector<16xf32> to vector<16x1xf32>
    %cst_23 = arith.constant 3.200000e+01 : f32
    %72 = vector.broadcast %cst_23 : f32 to vector<16x1xf32>
    %73 = arith.divf %71, %72 : vector<16x1xf32>
    %74 = vector.broadcast %66 : vector<16x1xf32> to vector<16x32xf32>
    %75 = arith.subf %62, %74 : vector<16x32xf32>
    %cst_24 = arith.constant 9.99999996E-13 : f32
    %76 = vector.broadcast %cst_24 : f32 to vector<16x1xf32>
    %77 = arith.addf %73, %76 : vector<16x1xf32>
    %78 = math.rsqrt %77 : vector<16x1xf32>
    %79 = vector.broadcast %78 : vector<16x1xf32> to vector<16x32xf32>
    %80 = arith.mulf %75, %79 : vector<16x32xf32>
    %81 = vector.broadcast %6 : vector<1x32xf32> to vector<16x32xf32>
    %82 = arith.mulf %80, %81 : vector<16x32xf32>
    %83 = vector.broadcast %7 : vector<1x32xf32> to vector<16x32xf32>
    %84 = arith.addf %82, %83 : vector<16x32xf32>
    %85 = arith.truncf %84 : vector<16x32xf32> to vector<16x32xbf16>
    %c0_25 = arith.constant 0 : index
    %c0_26 = arith.constant 0 : index
    %c0_27 = arith.constant 0 : index
    %86 = vector.load %arg4[%c0_25, %c0_26, %c0_27] : memref<2x32x64xbf16, #tpu.memory_space<vmem>>, vector<1x32x64xbf16>
    %87 = vector.shape_cast %86 : vector<1x32x64xbf16> to vector<32x64xbf16>
    %cst_28 = arith.constant dense<0.000000e+00> : vector<16x64xf32>
    %88 = tpu.matmul %85, %87, %cst_28 {dimension_numbers = #tpu.dot_dimension_numbers<[1], [0], [0], [1], [0, 0, 1, 1], [], []>} : vector<16x32xbf16>, vector<32x64xbf16>, vector<16x64xf32> -> vector<16x64xf32>
    %89 = vector.broadcast %8 : vector<1x64xf32> to vector<16x64xf32>
    %90 = arith.addf %88, %89 : vector<16x64xf32>
    %91 = arith.mulf %90, %90 : vector<16x64xf32>
    %92 = arith.mulf %90, %91 : vector<16x64xf32>
    %cst_29 = arith.constant 4.471500e-02 : f32
    %93 = vector.broadcast %cst_29 : f32 to vector<16x64xf32>
    %94 = arith.mulf %93, %92 : vector<16x64xf32>
    %95 = arith.addf %90, %94 : vector<16x64xf32>
    %cst_30 = arith.constant 0.797884583 : f32
    %96 = vector.broadcast %cst_30 : f32 to vector<16x64xf32>
    %97 = arith.mulf %96, %95 : vector<16x64xf32>
    %98 = math.tanh %97 : vector<16x64xf32>
    %cst_31 = arith.constant 1.000000e+00 : f32
    %99 = vector.broadcast %cst_31 : f32 to vector<16x64xf32>
    %100 = arith.addf %99, %98 : vector<16x64xf32>
    %cst_32 = arith.constant 5.000000e-01 : f32
    %101 = vector.broadcast %cst_32 : f32 to vector<16x64xf32>
    %102 = arith.mulf %101, %100 : vector<16x64xf32>
    %103 = arith.mulf %90, %102 : vector<16x64xf32>
    %104 = arith.truncf %103 : vector<16x64xf32> to vector<16x64xbf16>
    %c0_33 = arith.constant 0 : index
    %c0_34 = arith.constant 0 : index
    %c0_35 = arith.constant 0 : index
    %105 = vector.load %arg5[%c0_33, %c0_34, %c0_35] : memref<2x64x32xbf16, #tpu.memory_space<vmem>>, vector<1x64x32xbf16>
    %106 = vector.shape_cast %105 : vector<1x64x32xbf16> to vector<64x32xbf16>
    %cst_36 = arith.constant dense<0.000000e+00> : vector<16x32xf32>
    %107 = tpu.matmul %104, %106, %cst_36 {dimension_numbers = #tpu.dot_dimension_numbers<[1], [0], [0], [1], [0, 0, 1, 1], [], []>} : vector<16x64xbf16>, vector<64x32xbf16>, vector<16x32xf32> -> vector<16x32xf32>
    %108 = vector.broadcast %9 : vector<1x32xf32> to vector<16x32xf32>
    %109 = arith.addf %107, %108 : vector<16x32xf32>
    %110 = arith.addf %84, %109 : vector<16x32xf32>
    %cst_37 = arith.constant dense<0.000000e+00> : vector<16xf32>
    %111 = vector.multi_reduction <add>, %110, %cst_37 [1] : vector<16x32xf32> to vector<16xf32>
    %112 = vector.shape_cast %111 : vector<16xf32> to vector<16x1xf32>
    %cst_38 = arith.constant 3.200000e+01 : f32
    %113 = vector.broadcast %cst_38 : f32 to vector<16x1xf32>
    %114 = arith.divf %112, %113 : vector<16x1xf32>
    %115 = vector.broadcast %114 : vector<16x1xf32> to vector<16x32xf32>
    %116 = arith.subf %110, %115 : vector<16x32xf32>
    %117 = arith.mulf %116, %116 : vector<16x32xf32>
    %cst_39 = arith.constant dense<0.000000e+00> : vector<16xf32>
    %118 = vector.multi_reduction <add>, %117, %cst_39 [1] : vector<16x32xf32> to vector<16xf32>
    %119 = vector.shape_cast %118 : vector<16xf32> to vector<16x1xf32>
    %cst_40 = arith.constant 3.200000e+01 : f32
    %120 = vector.broadcast %cst_40 : f32 to vector<16x1xf32>
    %121 = arith.divf %119, %120 : vector<16x1xf32>
    %122 = vector.broadcast %114 : vector<16x1xf32> to vector<16x32xf32>
    %123 = arith.subf %110, %122 : vector<16x32xf32>
    %cst_41 = arith.constant 9.99999996E-13 : f32
    %124 = vector.broadcast %cst_41 : f32 to vector<16x1xf32>
    %125 = arith.addf %121, %124 : vector<16x1xf32>
    %126 = math.rsqrt %125 : vector<16x1xf32>
    %127 = vector.broadcast %126 : vector<16x1xf32> to vector<16x32xf32>
    %128 = arith.mulf %123, %127 : vector<16x32xf32>
    %129 = vector.broadcast %10 : vector<1x32xf32> to vector<16x32xf32>
    %130 = arith.mulf %128, %129 : vector<16x32xf32>
    %131 = vector.broadcast %11 : vector<1x32xf32> to vector<16x32xf32>
    %132 = arith.addf %130, %131 : vector<16x32xf32>
    %c1 = arith.constant 1 : index
    %c0_42 = arith.constant 0 : index
    %c0_43 = arith.constant 0 : index
    %133 = vector.load %arg6[%c1, %c0_42, %c0_43] : memref<2x8x128xf32, #tpu.memory_space<vmem>>, vector<1x8x128xf32>
    %134 = vector.shape_cast %133 : vector<1x8x128xf32> to vector<8x128xf32>
    %135 = vector.extract_strided_slice %134 {offsets = [0, 0], sizes = [1, 96], strides = [1, 1]} : vector<8x128xf32> to vector<1x96xf32>
    %136 = vector.extract_strided_slice %134 {offsets = [1, 0], sizes = [1, 32], strides = [1, 1]} : vector<8x128xf32> to vector<1x32xf32>
    %137 = vector.extract_strided_slice %134 {offsets = [2, 0], sizes = [1, 32], strides = [1, 1]} : vector<8x128xf32> to vector<1x32xf32>
    %138 = vector.extract_strided_slice %134 {offsets = [3, 0], sizes = [1, 32], strides = [1, 1]} : vector<8x128xf32> to vector<1x32xf32>
    %139 = vector.extract_strided_slice %134 {offsets = [4, 0], sizes = [1, 64], strides = [1, 1]} : vector<8x128xf32> to vector<1x64xf32>
    %140 = vector.extract_strided_slice %134 {offsets = [5, 0], sizes = [1, 32], strides = [1, 1]} : vector<8x128xf32> to vector<1x32xf32>
    %141 = vector.extract_strided_slice %134 {offsets = [6, 0], sizes = [1, 32], strides = [1, 1]} : vector<8x128xf32> to vector<1x32xf32>
    %142 = vector.extract_strided_slice %134 {offsets = [7, 0], sizes = [1, 32], strides = [1, 1]} : vector<8x128xf32> to vector<1x32xf32>
    %143 = arith.truncf %132 : vector<16x32xf32> to vector<16x32xbf16>
    %c1_44 = arith.constant 1 : index
    %c0_45 = arith.constant 0 : index
    %c0_46 = arith.constant 0 : index
    %144 = vector.load %arg2[%c1_44, %c0_45, %c0_46] : memref<2x32x96xbf16, #tpu.memory_space<vmem>>, vector<1x32x96xbf16>
    %145 = vector.shape_cast %144 : vector<1x32x96xbf16> to vector<32x96xbf16>
    %cst_47 = arith.constant dense<0.000000e+00> : vector<16x96xf32>
    %146 = tpu.matmul %143, %145, %cst_47 {dimension_numbers = #tpu.dot_dimension_numbers<[1], [0], [0], [1], [0, 0, 1, 1], [], []>} : vector<16x32xbf16>, vector<32x96xbf16>, vector<16x96xf32> -> vector<16x96xf32>
    %147 = vector.broadcast %135 : vector<1x96xf32> to vector<16x96xf32>
    %148 = arith.addf %146, %147 : vector<16x96xf32>
    %149 = arith.truncf %148 : vector<16x96xf32> to vector<16x96xbf16>
    %150 = vector.extract_strided_slice %149 {offsets = [0, 0], sizes = [16, 8], strides = [1, 1]} : vector<16x96xbf16> to vector<16x8xbf16>
    %151 = vector.extract_strided_slice %149 {offsets = [0, 8], sizes = [16, 8], strides = [1, 1]} : vector<16x96xbf16> to vector<16x8xbf16>
    %152 = vector.extract_strided_slice %149 {offsets = [0, 16], sizes = [16, 8], strides = [1, 1]} : vector<16x96xbf16> to vector<16x8xbf16>
    %153 = vector.extract_strided_slice %149 {offsets = [0, 24], sizes = [16, 8], strides = [1, 1]} : vector<16x96xbf16> to vector<16x8xbf16>
    %154 = tpu.concatenate %150, %151, %152, %153 in 0 : vector<16x8xbf16>, vector<16x8xbf16>, vector<16x8xbf16>, vector<16x8xbf16> -> vector<64x8xbf16>
    %155 = vector.extract_strided_slice %149 {offsets = [0, 32], sizes = [16, 8], strides = [1, 1]} : vector<16x96xbf16> to vector<16x8xbf16>
    %156 = vector.extract_strided_slice %149 {offsets = [0, 40], sizes = [16, 8], strides = [1, 1]} : vector<16x96xbf16> to vector<16x8xbf16>
    %157 = vector.extract_strided_slice %149 {offsets = [0, 48], sizes = [16, 8], strides = [1, 1]} : vector<16x96xbf16> to vector<16x8xbf16>
    %158 = vector.extract_strided_slice %149 {offsets = [0, 56], sizes = [16, 8], strides = [1, 1]} : vector<16x96xbf16> to vector<16x8xbf16>
    %159 = tpu.concatenate %155, %156, %157, %158 in 0 : vector<16x8xbf16>, vector<16x8xbf16>, vector<16x8xbf16>, vector<16x8xbf16> -> vector<64x8xbf16>
    %160 = vector.extract_strided_slice %149 {offsets = [0, 64], sizes = [16, 8], strides = [1, 1]} : vector<16x96xbf16> to vector<16x8xbf16>
    %161 = vector.extract_strided_slice %149 {offsets = [0, 72], sizes = [16, 8], strides = [1, 1]} : vector<16x96xbf16> to vector<16x8xbf16>
    %162 = vector.extract_strided_slice %149 {offsets = [0, 80], sizes = [16, 8], strides = [1, 1]} : vector<16x96xbf16> to vector<16x8xbf16>
    %163 = vector.extract_strided_slice %149 {offsets = [0, 88], sizes = [16, 8], strides = [1, 1]} : vector<16x96xbf16> to vector<16x8xbf16>
    %164 = tpu.concatenate %160, %161, %162, %163 in 0 : vector<16x8xbf16>, vector<16x8xbf16>, vector<16x8xbf16>, vector<16x8xbf16> -> vector<64x8xbf16>
    %cst_48 = arith.constant dense<0.000000e+00> : vector<64x64xf32>
    %165 = tpu.matmul %154, %159, %cst_48 {dimension_numbers = #tpu.dot_dimension_numbers<[1], [1], [0], [0], [0, 0, 1, 0], [], []>} : vector<64x8xbf16>, vector<64x8xbf16>, vector<64x64xf32> -> vector<64x64xf32>
    %166 = arith.addf %165, %1 : vector<64x64xf32>
    %cst_49 = arith.constant dense<0xFF800000> : vector<64xf32>
    %167 = vector.multi_reduction <maximumf>, %166, %cst_49 [1] : vector<64x64xf32> to vector<64xf32>
    %168 = vector.shape_cast %167 : vector<64xf32> to vector<64x1xf32>
    %169 = vector.broadcast %168 : vector<64x1xf32> to vector<64x64xf32>
    %170 = arith.subf %166, %169 : vector<64x64xf32>
    %171 = math.exp %170 : vector<64x64xf32>
    %cst_50 = arith.constant dense<0.000000e+00> : vector<64xf32>
    %172 = vector.multi_reduction <add>, %171, %cst_50 [1] : vector<64x64xf32> to vector<64xf32>
    %173 = vector.shape_cast %172 : vector<64xf32> to vector<64x1xf32>
    %174 = tpu.reciprocal %173 {approx = true} : vector<64x1xf32> -> vector<64x1xf32>
    %175 = vector.broadcast %174 : vector<64x1xf32> to vector<64x64xf32>
    %176 = arith.mulf %171, %175 : vector<64x64xf32>
    %c1_51 = arith.constant 1 : index
    %c0_52 = arith.constant 0 : index
    %c0_53 = arith.constant 0 : index
    %177 = vector.load %arg8[%c1_51, %c0_52, %c0_53] : memref<2x64x64xf32, #tpu.memory_space<vmem>>, vector<1x64x64xf32>
    %178 = vector.shape_cast %177 : vector<1x64x64xf32> to vector<64x64xf32>
    %179 = vector.shape_cast %176 : vector<64x64xf32> to vector<1x64x64xf32>
    tpu.vector_store %arg8[%c1_51, %c0_52, %c0_53], %179 {strides = array<i32>} : memref<2x64x64xf32, #tpu.memory_space<vmem>>, vector<1x64x64xf32>,
    %180 = arith.truncf %176 : vector<64x64xf32> to vector<64x64xbf16>
    %cst_54 = arith.constant dense<0.000000e+00> : vector<64x8xf32>
    %181 = tpu.matmul %180, %164, %cst_54 {dimension_numbers = #tpu.dot_dimension_numbers<[1], [0], [0], [1], [0, 0, 1, 1], [], []>} : vector<64x64xbf16>, vector<64x8xbf16>, vector<64x8xf32> -> vector<64x8xf32>
    %182 = vector.extract_strided_slice %181 {offsets = [0, 0], sizes = [16, 8], strides = [1, 1]} : vector<64x8xf32> to vector<16x8xf32>
    %183 = vector.extract_strided_slice %181 {offsets = [16, 0], sizes = [16, 8], strides = [1, 1]} : vector<64x8xf32> to vector<16x8xf32>
    %184 = vector.extract_strided_slice %181 {offsets = [32, 0], sizes = [16, 8], strides = [1, 1]} : vector<64x8xf32> to vector<16x8xf32>
    %185 = vector.extract_strided_slice %181 {offsets = [48, 0], sizes = [16, 8], strides = [1, 1]} : vector<64x8xf32> to vector<16x8xf32>
    %186 = tpu.concatenate %182, %183, %184, %185 in 1 : vector<16x8xf32>, vector<16x8xf32>, vector<16x8xf32>, vector<16x8xf32> -> vector<16x32xf32>
    %187 = arith.truncf %186 : vector<16x32xf32> to vector<16x32xbf16>
    %c1_55 = arith.constant 1 : index
    %c0_56 = arith.constant 0 : index
    %c0_57 = arith.constant 0 : index
    %188 = vector.load %arg3[%c1_55, %c0_56, %c0_57] : memref<2x32x32xbf16, #tpu.memory_space<vmem>>, vector<1x32x32xbf16>
    %189 = vector.shape_cast %188 : vector<1x32x32xbf16> to vector<32x32xbf16>
    %cst_58 = arith.constant dense<0.000000e+00> : vector<16x32xf32>
    %190 = tpu.matmul %187, %189, %cst_58 {dimension_numbers = #tpu.dot_dimension_numbers<[1], [0], [0], [1], [0, 0, 1, 1], [], []>} : vector<16x32xbf16>, vector<32x32xbf16>, vector<16x32xf32> -> vector<16x32xf32>
    %191 = vector.broadcast %136 : vector<1x32xf32> to vector<16x32xf32>
    %192 = arith.addf %190, %191 : vector<16x32xf32>
    %193 = arith.addf %132, %192 : vector<16x32xf32>
    %cst_59 = arith.constant dense<0.000000e+00> : vector<16xf32>
    %194 = vector.multi_reduction <add>, %193, %cst_59 [1] : vector<16x32xf32> to vector<16xf32>
    %195 = vector.shape_cast %194 : vector<16xf32> to vector<16x1xf32>
    %cst_60 = arith.constant 3.200000e+01 : f32
    %196 = vector.broadcast %cst_60 : f32 to vector<16x1xf32>
    %197 = arith.divf %195, %196 : vector<16x1xf32>
    %198 = vector.broadcast %197 : vector<16x1xf32> to vector<16x32xf32>
    %199 = arith.subf %193, %198 : vector<16x32xf32>
    %200 = arith.mulf %199, %199 : vector<16x32xf32>
    %cst_61 = arith.constant dense<0.000000e+00> : vector<16xf32>
    %201 = vector.multi_reduction <add>, %200, %cst_61 [1] : vector<16x32xf32> to vector<16xf32>
    %202 = vector.shape_cast %201 : vector<16xf32> to vector<16x1xf32>
    %cst_62 = arith.constant 3.200000e+01 : f32
    %203 = vector.broadcast %cst_62 : f32 to vector<16x1xf32>
    %204 = arith.divf %202, %203 : vector<16x1xf32>
    %205 = vector.broadcast %197 : vector<16x1xf32> to vector<16x32xf32>
    %206 = arith.subf %193, %205 : vector<16x32xf32>
    %cst_63 = arith.constant 9.99999996E-13 : f32
    %207 = vector.broadcast %cst_63 : f32 to vector<16x1xf32>
    %208 = arith.addf %204, %207 : vector<16x1xf32>
    %209 = math.rsqrt %208 : vector<16x1xf32>
    %210 = vector.broadcast %209 : vector<16x1xf32> to vector<16x32xf32>
    %211 = arith.mulf %206, %210 : vector<16x32xf32>
    %212 = vector.broadcast %137 : vector<1x32xf32> to vector<16x32xf32>
    %213 = arith.mulf %211, %212 : vector<16x32xf32>
    %214 = vector.broadcast %138 : vector<1x32xf32> to vector<16x32xf32>
    %215 = arith.addf %213, %214 : vector<16x32xf32>
    %216 = arith.truncf %215 : vector<16x32xf32> to vector<16x32xbf16>
    %c1_64 = arith.constant 1 : index
    %c0_65 = arith.constant 0 : index
    %c0_66 = arith.constant 0 : index
    %217 = vector.load %arg4[%c1_64, %c0_65, %c0_66] : memref<2x32x64xbf16, #tpu.memory_space<vmem>>, vector<1x32x64xbf16>
    %218 = vector.shape_cast %217 : vector<1x32x64xbf16> to vector<32x64xbf16>
    %cst_67 = arith.constant dense<0.000000e+00> : vector<16x64xf32>
    %219 = tpu.matmul %216, %218, %cst_67 {dimension_numbers = #tpu.dot_dimension_numbers<[1], [0], [0], [1], [0, 0, 1, 1], [], []>} : vector<16x32xbf16>, vector<32x64xbf16>, vector<16x64xf32> -> vector<16x64xf32>
    %220 = vector.broadcast %139 : vector<1x64xf32> to vector<16x64xf32>
    %221 = arith.addf %219, %220 : vector<16x64xf32>
    %222 = arith.mulf %221, %221 : vector<16x64xf32>
    %223 = arith.mulf %221, %222 : vector<16x64xf32>
    %cst_68 = arith.constant 4.471500e-02 : f32
    %224 = vector.broadcast %cst_68 : f32 to vector<16x64xf32>
    %225 = arith.mulf %224, %223 : vector<16x64xf32>
    %226 = arith.addf %221, %225 : vector<16x64xf32>
    %cst_69 = arith.constant 0.797884583 : f32
    %227 = vector.broadcast %cst_69 : f32 to vector<16x64xf32>
    %228 = arith.mulf %227, %226 : vector<16x64xf32>
    %229 = math.tanh %228 : vector<16x64xf32>
    %cst_70 = arith.constant 1.000000e+00 : f32
    %230 = vector.broadcast %cst_70 : f32 to vector<16x64xf32>
    %231 = arith.addf %230, %229 : vector<16x64xf32>
    %cst_71 = arith.constant 5.000000e-01 : f32
    %232 = vector.broadcast %cst_71 : f32 to vector<16x64xf32>
    %233 = arith.mulf %232, %231 : vector<16x64xf32>
    %234 = arith.mulf %221, %233 : vector<16x64xf32>
    %235 = arith.truncf %234 : vector<16x64xf32> to vector<16x64xbf16>
    %c1_72 = arith.constant 1 : index
    %c0_73 = arith.constant 0 : index
    %c0_74 = arith.constant 0 : index
    %236 = vector.load %arg5[%c1_72, %c0_73, %c0_74] : memref<2x64x32xbf16, #tpu.memory_space<vmem>>, vector<1x64x32xbf16>
    %237 = vector.shape_cast %236 : vector<1x64x32xbf16> to vector<64x32xbf16>
    %cst_75 = arith.constant dense<0.000000e+00> : vector<16x32xf32>
    %238 = tpu.matmul %235, %237, %cst_75 {dimension_numbers = #tpu.dot_dimension_numbers<[1], [0], [0], [1], [0, 0, 1, 1], [], []>} : vector<16x64xbf16>, vector<64x32xbf16>, vector<16x32xf32> -> vector<16x32xf32>
    %239 = vector.broadcast %140 : vector<1x32xf32> to vector<16x32xf32>
    %240 = arith.addf %238, %239 : vector<16x32xf32>
    %241 = arith.addf %215, %240 : vector<16x32xf32>
    %cst_76 = arith.constant dense<0.000000e+00> : vector<16xf32>
    %242 = vector.multi_reduction <add>, %241, %cst_76 [1] : vector<16x32xf32> to vector<16xf32>
    %243 = vector.shape_cast %242 : vector<16xf32> to vector<16x1xf32>
    %cst_77 = arith.constant 3.200000e+01 : f32
    %244 = vector.broadcast %cst_77 : f32 to vector<16x1xf32>
    %245 = arith.divf %243, %244 : vector<16x1xf32>
    %246 = vector.broadcast %245 : vector<16x1xf32> to vector<16x32xf32>
    %247 = arith.subf %241, %246 : vector<16x32xf32>
    %248 = arith.mulf %247, %247 : vector<16x32xf32>
    %cst_78 = arith.constant dense<0.000000e+00> : vector<16xf32>
    %249 = vector.multi_reduction <add>, %248, %cst_78 [1] : vector<16x32xf32> to vector<16xf32>
    %250 = vector.shape_cast %249 : vector<16xf32> to vector<16x1xf32>
    %cst_79 = arith.constant 3.200000e+01 : f32
    %251 = vector.broadcast %cst_79 : f32 to vector<16x1xf32>
    %252 = arith.divf %250, %251 : vector<16x1xf32>
    %253 = vector.broadcast %245 : vector<16x1xf32> to vector<16x32xf32>
    %254 = arith.subf %241, %253 : vector<16x32xf32>
    %cst_80 = arith.constant 9.99999996E-13 : f32
    %255 = vector.broadcast %cst_80 : f32 to vector<16x1xf32>
    %256 = arith.addf %252, %255 : vector<16x1xf32>
    %257 = math.rsqrt %256 : vector<16x1xf32>
    %258 = vector.broadcast %257 : vector<16x1xf32> to vector<16x32xf32>
    %259 = arith.mulf %254, %258 : vector<16x32xf32>
    %260 = vector.broadcast %141 : vector<1x32xf32> to vector<16x32xf32>
    %261 = arith.mulf %259, %260 : vector<16x32xf32>
    %262 = vector.broadcast %142 : vector<1x32xf32> to vector<16x32xf32>
    %263 = arith.addf %261, %262 : vector<16x32xf32>
    %c0_81 = arith.constant 0 : index
    %c0_82 = arith.constant 0 : index
    %264 = vector.load %arg7[%c0_81, %c0_82] : memref<16x32xf32, #tpu.memory_space<vmem>>, vector<16x32xf32>
    tpu.vector_store %arg7[%c0_81, %c0_82], %263 {strides = array<i32>} : memref<16x32xf32, #tpu.memory_space<vmem>>, vector<16x32xf32>,
    return
  }
}

</mosaic_0001>

<bundles_post_ra>
// kernel: tpu_custom_call.1
= control target key start
LH: loop header
LB: loop body
LE: loop exit
PB: predicated region body
PF: predicated region fallthrough
CT: control target
= control target key end

     0   :  { %14 = vsyncpa [#allocation3], 0  ;;  %s2598_s0 = inlined_call_operand.hbm [shape: f32[16,32], index: 0, kind: input, shape index: {}]   ;;  %s2599_s1 = inlined_call_operand.vmem [shape: f32[64,64], index: 1, kind: input, shape index: {}]   ;;  %s2600_s2 = inlined_call_operand.vmem [shape: bf16[2,32,96], index: 2, kind: input, shape index: {}]   ;;  %s2601_s3 = inlined_call_operand.hbm [shape: bf16[2,32,32], index: 3, kind: input, shape index: {}]   ;;  %s2602_s4 = inlined_call_operand.hbm [shape: bf16[2,32,64], index: 4, kind: input, shape index: {}]   ;;  %s2603_s5 = inlined_call_operand.vmem [shape: bf16[2,64,32], index: 5, kind: input, shape index: {}]   ;;  %s2604_s6 = inlined_call_operand.vmem [shape: f32[2,8,128], index: 6, kind: input, shape index: {}]   ;;  %s2605_s7 = inlined_call_operand.hbm [shape: f32[16,32], index: 7, kind: output, shape index: {0}]   ;;  %s2606_s8 = inlined_call_operand.hbm [shape: f32[2,64,64], index: 8, kind: output, shape index: {1}]  }
   0x1   :  { %15 = vsyncpa [#allocation6], 0 }
   0x2   :  { %16 = vsyncpa [#allocation4], 0 }
   0x3   :  { %17 = vsyncpa [#allocation10], 0  ;;  %s2062_s27 = smov [#allocation5]   ;;  %s1944_s9 = scalar_lea.hbm %s2601_s3, 512 }
   0x4   :  { %s39_s28 = sshll.u32 %s2062_s27, 4  ;;  %p1945_p0 = scmp.ne.s32.totalorder %s2601_s3, %s1944_s9  ;;  %s40_s28 = int_to_ptr.vmem [resolvable:$true] %s39_s28 }
   0x5   :  { %p1948_p1 = scmp.lt.u32.totalorder %s1944_s9, %s2601_s3 }
   0x7   :  { %p1950_p2 = pnand %p1948_p1, %p1945_p0 }
   0x9   :  { %1953 = shalt.err (!%p1950_p2)
}
   0xa   :  { %s1954_s14 = scalar_lea.vmem %s40_s28, 512  ;;  %p1959_p4 = scmp.lt.s32.totalorder %s40_s28, %s40_s28 }
   0xb   :  { %p1955_p3 = scmp.ne.s32.totalorder %s40_s28, %s1954_s14  ;;  %p1960_p5 = scmp.lt.s32.totalorder %s1954_s14, %s1954_s14 }
   0xd   :  { %p1961_p6 = por %p1960_p5, %p1959_p4 }
   0xf   :  { %p1962_p7 = pnand %p1961_p6, %p1955_p3 }
  0x11   :  { %1965 = shalt.err (!%p1962_p7)
}
  0x12   :  { %s2063_s15 = smov 64   ;;  %s2064_s16 = smov 4  }
  0x13   :  { %45 = dma.hbm_to_vmem [thread:$0]  %s2601_s3, 512, %s40_s28, [#allocation6], %s2063_s15, %s2063_s15, %s2064_s16  }
  0x14   :  { %s2065_s19 = smov [#allocation2]   ;;  %s1966_s23 = scalar_lea.hbm %s2598_s0, 256 }
  0x15   :  { %s23_s20 = sshll.u32 %s2065_s19, 4  ;;  %p1967_p8 = scmp.ne.s32.totalorder %s2598_s0, %s1966_s23  ;;  %s24_s20 = int_to_ptr.vmem [resolvable:$true] %s23_s20 }
  0x16   :  { %p1970_p9 = scmp.lt.u32.totalorder %s1966_s23, %s2598_s0 }
  0x18   :  { %p1972_p10 = pnand %p1970_p9, %p1967_p8 }
  0x1a   :  { %1975 = shalt.err (!%p1972_p10)
}
  0x1b   :  { %s1976_s29 = scalar_lea.vmem %s24_s20, 256  ;;  %p1981_p12 = scmp.lt.s32.totalorder %s24_s20, %s24_s20 }
  0x1c   :  { %p1977_p11 = scmp.ne.s32.totalorder %s24_s20, %s1976_s29  ;;  %p1982_p13 = scmp.lt.s32.totalorder %s1976_s29, %s1976_s29 }
  0x1e   :  { %p1983_p0 = por %p1982_p13, %p1981_p12 }
  0x20   :  { %p1984_p1 = pnand %p1983_p0, %p1977_p11 }
  0x22   :  { %1987 = shalt.err (!%p1984_p1)
}
  0x23   :  { %s2066_s3 = smov 128   ;;  %s2067_s28 = smov 8  }
  0x24   :  { %29 = dma.hbm_to_vmem [thread:$0]  %s2598_s0, 256, %s24_s20, [#allocation3], %s2066_s3, %s2066_s3, %s2067_s28  }
  0x25   :  { %s2068_s10 = smov [#allocation7]   ;;  %s1988_s14 = scalar_lea.hbm %s2602_s4, 512 }
  0x26   :  { %s51_s11 = sshll.u32 %s2068_s10, 4  ;;  %p1989_p2 = scmp.ne.s32.totalorder %s2602_s4, %s1988_s14  ;;  %s52_s11 = int_to_ptr.vmem [resolvable:$true] %s51_s11 }
  0x27   :  { %p1992_p3 = scmp.lt.u32.totalorder %s1988_s14, %s2602_s4 }
  0x29   :  { %p1994_p4 = pnand %p1992_p3, %p1989_p2 }
  0x2b   :  { %1997 = shalt.err (!%p1994_p4)
}
  0x2c   :  { %s1998_s22 = scalar_lea.vmem %s52_s11, 512  ;;  %p2003_p6 = scmp.lt.s32.totalorder %s52_s11, %s52_s11 }
  0x2d   :  { %p1999_p5 = scmp.ne.s32.totalorder %s52_s11, %s1998_s22  ;;  %p2004_p7 = scmp.lt.s32.totalorder %s1998_s22, %s1998_s22 }
  0x2f   :  { %p2005_p8 = por %p2004_p7, %p2003_p6 }
  0x31   :  { %p2006_p9 = pnand %p2005_p8, %p1999_p5 }
  0x33   :  { %2009 = shalt.err (!%p2006_p9)
}
  0x34   :  { %57 = dma.hbm_to_vmem [thread:$0]  %s2602_s4, 512, %s52_s11, [#allocation6], %s2063_s15, %s2063_s15, %s2064_s16  }
  0x35   :  { %2054 = dma.done.wait [#allocation3], 256  }
  0x36   :  { %2055 = vsyncadd [#allocation3], 4294967040 }
  0x37   :  { %2056 = dma.done.wait [#allocation6], 1024  }
  0x38   :  { %2057 = vsyncadd [#allocation6], 4294966272  ;;  %v2069_v0 = vmov 0.0   ;;  %vm2070_vm0 = vmmov 0   ;;  %v1836_v1 = vld [vmem:[%s2600_s2] sm:$0xff]   ;;  %v1837_v2 = vld [vmem:[%s2600_s2 + $0x8] sm:$0xff]   ;;  %v88_v6 = vlaneseq }
  0x39   :  { %1645 = vmatprep.subr.bf16.mxu0 %v2069_v0  ;;  %1649 = vmatprep.mubr.msk.bf16.mxu0 %vm2070_vm0, %v2069_v0  ;;  %v2178_v3 = vld [vmem:[#allocation2] sm:$0xff]  ;;  %v2180_v4 = vld [vmem:[#allocation2 + $0x8] sm:$0xff]  ;;  %vm104_vm1 = vcmask 261120   ;;  %vm165_vm2 = vcmask 64512   ;;  %s2071_s27 = smov 104   ;;  %s2072_s29 = smov 120  }
  0x3a   :  { %1646 = vmatpush3.bf16.msra.mxu0 %v1836_v1  ;;  %v83_v5 = vpack.c.bf16 %v2180_v4, %v2178_v3  ;;  %v2186_v7 = vshrl.u32 %v88_v6, 7  ;;  %v2192_v9 = vld [vmem:[%s2604_s6] sm:$0xff]  ;;  %s2073_s30 = smov 96   ;;  %s2074_s9 = smov 112   ;;  %v2246_v32 = vld [vmem:[%s2599_s1 + $0x18] sm:$0xff]  ;;  %v2251_v33 = vld [vmem:[%s2599_s1 + $0x8] sm:$0xff] }
  0x3b   :  { %1647 = vmatprep.subr.bf16.mxu0 %v2069_v0  ;;  %v2241_v29 = vld [vmem:[%s2599_s1] sm:$0xff]  ;;  %vm255_vm3 = vcmask 523264   ;;  %v2257_v36 = vld [vmem:[%s2599_s1 + $0x10] sm:$0xff]  ;;  %v2273_v47 = vld [vmem:[%s2599_s1 + $0x28] sm:$0xff]  ;;  %s2076_s4 = smov 16   ;;  %vm471_vm4 = vcmask 130048  }
  0x3c   :  { %v90_v8 = vsub.s32 0, %v2186_v7  ;;  %v2267_v43 = vld [vmem:[%s2599_s1 + $0x20] sm:$0xff]  ;;  %v2280_v51 = vld [vmem:[%s2599_s1 + $0x30] sm:$0xff]  ;;  %v2285_v52 = vld [vmem:[%s2599_s1 + $0x38] sm:$0xff]  ;;  %s2075_s1 = smov 24   ;;  %vm474_vm5 = vcmask 195584  }
  0x3e   :  { %1648 = vmatpush3.bf16.msra.mxu0 %v1837_v2  ;;  %v91_v10 = vrot.slane %v2192_v9, %v90_v8 }
  0x41   :  { %1650 = vmatmul.mubr.msk.bf16.vlgmr.msra.gmra.mrb[0].mxu0 %vm104_vm1, %v83_v5 }
 0x114   :  { %v142_v11 = vpop.f32.mrb[0].mxu0 }
 0x115   :  { %v1651_v12 = vpop.f32.mrb[1].mxu0  ;;  %v143_v14 = vadd.f32 %v142_v11, %v91_v10 }
 0x116   :  { %v145_v13 = vpop.f32.mrb[2].mxu0 }
 0x117   :  { %v146_v15 = vadd.f32 %v145_v13, %v91_v10  ;;  %v1652_v16 = vpop.f32.mrb[3].mxu0 }
 0x119   :  { %v2197_v17 = vpack.c.bf16 %v146_v15, %v143_v14 }
 0x11b   :  { %155 = vrot.lane.b32.xlu1 %v2197_v17, %s2071_s27  ;;  %151 = vrot.lane.b32.xlu0 %v2197_v17, %s2072_s29 }
 0x11c   :  { %1661 = vmatprep.mubr.msk.bf16.mxu1 %vm165_vm2, %v2197_v17 }
 0x11f   :  { %157 = vrot.lane.b32.xlu1 %v2197_v17, %s2073_s30  ;;  %153 = vrot.lane.b32.xlu0 %v2197_v17, %s2074_s9 }
 0x18d   :  { %v2209_v18 = vpop.permute.xlu1 %155  ;;  %v2211_v19 = vpop.permute.xlu0 %151 }
 0x18e   :  { %159 = vrot.lane.b32.xlu0 %v2211_v19, %s2073_s30 }
 0x191   :  { %v158_v20 = vpop.permute.xlu1 %157  ;;  %v2215_v21 = vpop.permute.xlu0 %153 }
 0x192   :  { %1781 = vmatprep.subr.msk.bf16.mxu1 %vm165_vm2, %v158_v20  ;;  %163 = vrot.lane.b32.xlu0 %v2209_v18, %s2073_s30  ;;  %v179_v22 = vsel %vm165_vm2, %v158_v20, 0 }
 0x193   :  { %161 = vrot.lane.b32.xlu1 %v2215_v21, %s2073_s30  ;;  %1654 = vmatpush3.bf16.xpose.msra.mxu1 %v179_v22 }
 0x200   :  { %v160_v23 = vpop.permute.xlu0 %159 }
 0x201   :  { %1782 = vmatprep.subr.msk.bf16.mxu1 %vm165_vm2, %v160_v23  ;;  %v182_v24 = vsel %vm165_vm2, %v160_v23, 0 }
 0x202   :  { %1656 = vmatpush3.bf16.xpose.msra.mxu1 %v182_v24 }
 0x204   :  { %v164_v27 = vpop.permute.xlu0 %163 }
 0x205   :  { %v162_v25 = vpop.permute.xlu1 %161  ;;  %v188_v28 = vsel %vm165_vm2, %v164_v27, 0 }
 0x206   :  { %1783 = vmatprep.subr.msk.bf16.mxu1 %vm165_vm2, %v162_v25  ;;  %v185_v26 = vsel %vm165_vm2, %v162_v25, 0 }
 0x20a   :  { %1658 = vmatpush3.bf16.xpose.msra.mxu1 %v185_v26 }
 0x20b   :  { %1784 = vmatprep.subr.msk.bf16.mxu1 %vm165_vm2, %v164_v27 }
 0x212   :  { %1660 = vmatpush3.bf16.xpose.msra.mxu1 %v188_v28 }
 0x213   :  { %1701 = vmatprep.subr.bf16.mxu1 %v2069_v0 }
 0x219   :  { %1662 = vmatmul.mubr.msk.bf16.vlgmr.msra.gmra.mrb[0].mxu1 %vm165_vm2, %v2211_v19 }
 0x21a   :  { %1665 = vmatprep.mubr.msk.bf16.mxu1 %vm165_vm2, %v2215_v21 }
 0x221   :  { %1666 = vmatmul.mubr.msk.bf16.gmra.mrb[4].mxu1 %vm165_vm2, %v2209_v18 }
 0x222   :  { %1709 = vmatprep.mubr.msk.bf16.mxu1 %vm2070_vm0, %v2069_v0 }
 0x2ec   :  { %v1663_v30 = vpop.f32.mrb[0].mxu1 }
 0x2ed   :  { %v224_v31 = vpop.f32.mrb[1].mxu1  ;;  %v233_v41 = vadd.f32 %v1663_v30, %v2257_v36 }
 0x2ee   :  { %v225_v34 = vadd.f32 %v224_v31, %v2241_v29  ;;  %v1664_v35 = vpop.f32.mrb[2].mxu1 }
 0x2ef   :  { %v227_v37 = vpop.f32.mrb[3].mxu1  ;;  %v236_v38 = vadd.f32 %v1664_v35, %v2246_v32  ;;  %v262_v50 = vsel %vm255_vm3, %v233_v41, -inf }
 0x2f0   :  { %v228_v39 = vadd.f32 %v227_v37, %v2251_v33  ;;  %v256_v40 = vsel %vm255_vm3, %v225_v34, -inf }
 0x2f1   :  { %257 = vmax.xlane.f32.xlu1 %v256_v40  ;;  %v265_v45 = vsel %vm255_vm3, %v236_v38, -inf }
 0x2f2   :  { %v259_v42 = vsel %vm255_vm3, %v228_v39, -inf }
 0x2f3   :  { %260 = vmax.xlane.f32.xlu0 %v259_v42 }
 0x2f4   :  { %v1667_v44 = vpop.f32.mrb[4].mxu1 }
 0x2f5   :  { %v240_v46 = vpop.f32.mrb[5].mxu1  ;;  %266 = vmax.xlane.f32.xlu1 %v265_v45  ;;  %v249_v55 = vadd.f32 %v1667_v44, %v2280_v51 }
 0x2f6   :  { %v241_v48 = vadd.f32 %v240_v46, %v2267_v43  ;;  %v1668_v49 = vpop.f32.mrb[6].mxu1 }
 0x2f7   :  { %v243_v53 = vpop.f32.mrb[7].mxu1  ;;  %263 = vmax.xlane.f32.xlu0 %v262_v50  ;;  %v252_v56 = vadd.f32 %v1668_v49, %v2285_v52  ;;  %v274_v59 = vsel %vm255_vm3, %v249_v55, -inf }
 0x2f8   :  { %v244_v54 = vadd.f32 %v243_v53, %v2273_v47  ;;  %v268_v57 = vsel %vm255_vm3, %v241_v48, -inf }
 0x2f9   :  { %v277_v60 = vsel %vm255_vm3, %v252_v56, -inf }
 0x2fa   :  { %v271_v58 = vsel %vm255_vm3, %v244_v54, -inf }
 0x2fb   :  { %269 = vmax.xlane.f32.xlu0 %v268_v57  ;;  %272 = vmax.xlane.f32.xlu1 %v271_v58 }
 0x2ff   :  { %275 = vmax.xlane.f32.xlu0 %v274_v59  ;;  %278 = vmax.xlane.f32.xlu1 %v277_v60 }
 0x310   :  { %358 = vrot.lane.b32.xlu1 %v2211_v19, %s2063_s15 }
 0x315   :  { %356 = vrot.lane.b32.xlu0 %v2197_v17, %s2063_s15 }
 0x37e   :  { %v258_v61 = vpop.xlane.xlu1 %257 }
 0x37f   :  { %v280_v2 = vsub.f32 %v225_v34, %v258_v61 }
 0x380   :  { %v261_v62 = vpop.xlane.xlu0 %260 }
 0x381   :  { %v281_v63 = vsub.f32 %v228_v39, %v261_v62  ;;  %v288_v13 = vmul.f32 1.442695, %v280_v2 }
 0x382   :  { %v267_v1 = vpop.xlane.xlu1 %266 }
 0x383   :  { %v283_v5 = vsub.f32 %v236_v38, %v267_v1  ;;  %v290_v6 = vmul.f32 1.442695, %v281_v63 }
 0x384   :  { %v264_v10 = vpop.xlane.xlu0 %263 }
 0x385   :  { %v294_v11 = vmul.f32 1.442695, %v283_v5  ;;  %v282_v12 = vsub.f32 %v233_v41, %v264_v10 }
 0x387   :  { %1856 = vpow2.f32 %v294_v11  ;;  %v292_v14 = vmul.f32 1.442695, %v282_v12 }
 0x388   :  { %1858 = vpow2.f32 %v290_v6  ;;  %v270_v15 = vpop.xlane.xlu0 %269  ;;  %v273_v16 = vpop.xlane.xlu1 %272 }
 0x389   :  { %1860 = vpow2.f32 %v292_v14  ;;  %v284_v19 = vsub.f32 %v241_v48, %v270_v15  ;;  %v285_v17 = vsub.f32 %v244_v54, %v273_v16 }
 0x38a   :  { %1862 = vpow2.f32 %v288_v13 }
 0x38b   :  { %v296_v25 = vmul.f32 1.442695, %v284_v19  ;;  %v298_v28 = vmul.f32 1.442695, %v285_v17 }
 0x38c   :  { %v276_v20 = vpop.xlane.xlu0 %275  ;;  %v279_v22 = vpop.xlane.xlu1 %278 }
 0x38d   :  { %v286_v23 = vsub.f32 %v249_v55, %v276_v20  ;;  %v287_v24 = vsub.f32 %v252_v56, %v279_v22 }
 0x38f   :  { %v300_v26 = vmul.f32 1.442695, %v286_v23  ;;  %v302_v27 = vmul.f32 1.442695, %v287_v24 }
 0x390   :  { %v357_v30 = vpop.permute.xlu0 %356  ;;  %v359_v35 = vpop.permute.xlu1 %358 }
 0x391   :  { %v1857_v31 = vpop.eup %1856  ;;  %1864 = vpow2.f32 %v300_v26  ;;  %1669 = vmatprep.subr.bf16.mxu0 %v357_v30 }
 0x392   :  { %v1859_v34 = vpop.eup %1858  ;;  %1866 = vpow2.f32 %v302_v27  ;;  %1670 = vmatpush3.bf16.msra.mxu0 %v357_v30  ;;  %v313_v37 = vsel %vm255_vm3, %v1857_v31, 0.0  ;;  %v1838_v27 = vld [vmem:[#allocation5] sm:$0xff]  }
 0x393   :  { %v1861_v38 = vpop.eup %1860  ;;  %1868 = vpow2.f32 %v296_v25  ;;  %314 = vadd.xlane.f32.xlu1 %v313_v37  ;;  %1671 = vmatprep.subr.bf16.mxu0 %v359_v35  ;;  %v307_v41 = vsel %vm255_vm3, %v1859_v34, 0.0 }
 0x394   :  { %1870 = vpow2.f32 %v298_v28  ;;  %v310_v39 = vsel %vm255_vm3, %v1861_v38, 0.0  ;;  %v1863_v40 = vpop.eup %1862  ;;  %v1839_v28 = vld [vmem:[#allocation5 + $0x8] sm:$0xff]  }
 0x395   :  { %311 = vadd.xlane.f32.xlu0 %v310_v39  ;;  %v304_v42 = vsel %vm255_vm3, %v1863_v40, 0.0 }
 0x396   :  { %1672 = vmatpush3.bf16.msra.mxu0 %v359_v35 }
 0x397   :  { %308 = vadd.xlane.f32.xlu1 %v307_v41 }
 0x399   :  { %305 = vadd.xlane.f32.xlu0 %v304_v42 }
 0x39b   :  { %v1865_v44 = vpop.eup %1864 }
 0x39c   :  { %v1867_v45 = vpop.eup %1866  ;;  %v322_v46 = vsel %vm255_vm3, %v1865_v44, 0.0 }
 0x39d   :  { %v1869_v48 = vpop.eup %1868  ;;  %323 = vadd.xlane.f32.xlu0 %v322_v46  ;;  %v325_v49 = vsel %vm255_vm3, %v1867_v45, 0.0 }
 0x39e   :  { %v1871_v50 = vpop.eup %1870  ;;  %326 = vadd.xlane.f32.xlu1 %v325_v49  ;;  %v316_v53 = vsel %vm255_vm3, %v1869_v48, 0.0 }
 0x39f   :  { %v319_v54 = vsel %vm255_vm3, %v1871_v50, 0.0 }
 0x3a1   :  { %317 = vadd.xlane.f32.xlu0 %v316_v53 }
 0x3a2   :  { %320 = vadd.xlane.f32.xlu1 %v319_v54 }
 0x3b3   :  { %360 = vrot.lane.b32.xlu1 %v2215_v21, %s2063_s15 }
 0x3b7   :  { %362 = vrot.lane.b32.xlu0 %v2209_v18, %s2063_s15 }
 0x420   :  { %v315_v55 = vpop.xlane.xlu1 %314 }
 0x421   :  { %1872 = vrcp.f32 %v315_v55 }
 0x422   :  { %v312_v56 = vpop.xlane.xlu0 %311 }
 0x423   :  { %1874 = vrcp.f32 %v312_v56 }
 0x424   :  { %v309_v57 = vpop.xlane.xlu1 %308 }
 0x425   :  { %1876 = vrcp.f32 %v309_v57 }
 0x426   :  { %v306_v58 = vpop.xlane.xlu0 %305 }
 0x427   :  { %1878 = vrcp.f32 %v306_v58 }
 0x42a   :  { %v324_v59 = vpop.xlane.xlu0 %323 }
 0x42b   :  { %v1873_v60 = vpop.eup %1872  ;;  %1880 = vrcp.f32 %v324_v59  ;;  %v327_v61 = vpop.xlane.xlu1 %326 }
 0x42c   :  { %v339_v62 = vmul.f32 %v1873_v60, %v1857_v31  ;;  %1882 = vrcp.f32 %v327_v61 }
 0x42d   :  { %v1875_v63 = vpop.eup %1874 }
 0x42e   :  { %347 = vst.msk [vmem:[#allocation9 + $0x18] sm:$0xff] %vm255_vm3, %v339_v62  ;;  %v338_v21 = vmul.f32 %v1875_v63, %v1861_v38  ;;  %v318_v1 = vpop.xlane.xlu0 %317 }
 0x42f   :  { %v1877_v18 = vpop.eup %1876  ;;  %1884 = vrcp.f32 %v318_v1  ;;  %v321_v2 = vpop.xlane.xlu1 %320 }
 0x430   :  { %346 = vst.msk [vmem:[#allocation9 + $0x10] sm:$0xff] %vm255_vm3, %v338_v21  ;;  %1886 = vrcp.f32 %v321_v2  ;;  %v337_v5 = vmul.f32 %v1877_v18, %v1859_v34  ;;  %v353_v22 = vpack.c.bf16 %v339_v62, %v338_v21  ;;  %v484_v21 = vsub.s32 1, %v2186_v7 }
 0x431   :  { %v1879_v6 = vpop.eup %1878 }
 0x432   :  { %v336_v10 = vmul.f32 %v1879_v6, %v1863_v40  ;;  %345 = vst.msk [vmem:[#allocation9 + $0x8] sm:$0xff] %vm255_vm3, %v337_v5  ;;  %v363_v14 = vpop.permute.xlu0 %362  ;;  %v485_v1 = vrot.slane %v2192_v9, %v484_v21 }
 0x433   :  { %v361_v11 = vpop.permute.xlu1 %360 }
 0x434   :  { %1673 = vmatprep.subr.bf16.mxu0 %v361_v11  ;;  %344 = vst.msk [vmem:[#allocation9] sm:$0xff] %vm255_vm3, %v336_v10  ;;  %v352_v12 = vpack.c.bf16 %v337_v5, %v336_v10 }
 0x435   :  { %v1881_v13 = vpop.eup %1880  ;;  %1674 = vmatpush3.bf16.msra.mxu0 %v361_v11 }
 0x436   :  { %v1883_v15 = vpop.eup %1882  ;;  %1675 = vmatprep.subr.bf16.mxu0 %v363_v14  ;;  %1677 = vmatprep.mubr.msk.bf16.mxu0 %vm255_vm3, %v352_v12  ;;  %v342_v16 = vmul.f32 %v1881_v13, %v1865_v44 }
 0x437   :  { %v343_v19 = vmul.f32 %v1883_v15, %v1867_v45 }
 0x438   :  { %350 = vst.msk [vmem:[#allocation9 + $0x30] sm:$0xff] %vm255_vm3, %v342_v16 }
 0x439   :  { %v1885_v17 = vpop.eup %1884  ;;  %1676 = vmatpush3.bf16.msra.mxu0 %v363_v14  ;;  %351 = vst.msk [vmem:[#allocation9 + $0x38] sm:$0xff] %vm255_vm3, %v343_v19  ;;  %v355_v26 = vpack.c.bf16 %v343_v19, %v342_v16 }
 0x43a   :  { %v1887_v20 = vpop.eup %1886  ;;  %v340_v23 = vmul.f32 %v1885_v17, %v1869_v48  ;;  %1685 = vmatprep.subr.bf16.mxu0 %v2069_v0 }
 0x43b   :  { %v341_v24 = vmul.f32 %v1887_v20, %v1871_v50 }
 0x43c   :  { %1678 = vmatmul.mubr.msk.bf16.vlgmr.msra.gmra.mrb[4].mxu0 %vm255_vm3, %v353_v22  ;;  %348 = vst.msk [vmem:[#allocation9 + $0x20] sm:$0xff] %vm255_vm3, %v340_v23 }
 0x43d   :  { %349 = vst.msk [vmem:[#allocation9 + $0x28] sm:$0xff] %vm255_vm3, %v341_v24  ;;  %v354_v25 = vpack.c.bf16 %v341_v24, %v340_v23  ;;  %1686 = vmatpush3.bf16.msra.mxu0 %v1838_v27  ;;  %v1840_v27 = vld [vmem:[#allocation7] sm:$0xff]  }
 0x43e   :  { %1687 = vmatprep.subr.bf16.mxu0 %v2069_v0 }
 0x43f   :  { %1681 = vmatprep.mubr.msk.bf16.mxu0 %vm255_vm3, %v354_v25 }
 0x441   :  { %1688 = vmatpush3.bf16.msra.mxu0 %v1839_v28 }
 0x442   :  { %1693 = vmatprep.subr.bf16.mxu0 %v2069_v0 }
 0x444   :  { %1682 = vmatmul.mubr.msk.bf16.gmra.mrb[8].mxu0 %vm255_vm3, %v355_v26 }
 0x445   :  { %1689 = vmatprep.mubr.msk.bf16.mxu0 %vm2070_vm0, %v2069_v0 }
 0x50f   :  { %v1679_v30 = vpop.f32.mrb[4].mxu0 }
 0x510   :  { %v414_v31 = vpop.f32.mrb[5].mxu0 }
 0x511   :  { %v1680_v34 = vpop.f32.mrb[6].mxu0 }
 0x512   :  { %v1806_v35 = vpack.i.bf16 %v1680_v34, %v1679_v30  ;;  %v417_v37 = vpop.f32.mrb[7].mxu0 }
 0x514   :  { %1807 = vrot.lane.b32.xlu1 %v1806_v35, %s2067_s28 }
 0x517   :  { %v1683_v38 = vpop.f32.mrb[8].mxu0 }
 0x518   :  { %v430_v39 = vpop.f32.mrb[9].mxu0 }
 0x519   :  { %v1684_v40 = vpop.f32.mrb[10].mxu0 }
 0x51a   :  { %v1816_v41 = vpack.i.bf16 %v1684_v40, %v1683_v38  ;;  %v433_v42 = vpop.f32.mrb[11].mxu0  ;;  %v573_v38 = vsub.s32 2, %v2186_v7 }
 0x51b   :  { %v1811_v44 = vpack.i.bf16 %v433_v42, %v430_v39  ;;  %v579_v42 = vsub.s32 3, %v2186_v7 }
 0x51c   :  { %1817 = vrot.lane.b32.xlu1 %v1816_v41, %s2075_s1  ;;  %v574_v40 = vrot.slane %v2192_v9, %v573_v38 }
 0x51d   :  { %1812 = vrot.lane.b32.xlu0 %v1811_v44, %s2076_s4 }
 0x586   :  { %v1808_v45 = vpop.permute.xlu1 %1807 }
 0x587   :  { %v1810_v46 = vunpack.i.h.bf16 %v1808_v45  ;;  %v1809_v48 = vunpack.i.l.bf16 %v1808_v45 }
 0x589   :  { %v469_v55 = vsel %vm165_vm2, %v414_v31, %v1809_v48  ;;  %v470_v56 = vsel %vm165_vm2, %v417_v37, %v1810_v46  ;;  %v580_v48 = vrot.slane %v2192_v9, %v579_v42 }
 0x58e   :  { %v1818_v49 = vpop.permute.xlu1 %1817 }
 0x58f   :  { %v1813_v50 = vpop.permute.xlu0 %1812  ;;  %v1820_v57 = vunpack.i.h.bf16 %v1818_v49  ;;  %v1819_v58 = vunpack.i.l.bf16 %v1818_v49 }
 0x590   :  { %v1815_v53 = vunpack.i.h.bf16 %v1813_v50  ;;  %v1814_v54 = vunpack.i.l.bf16 %v1813_v50 }
 0x592   :  { %v473_v59 = vsel %vm471_vm4, %v470_v56, %v1815_v53  ;;  %v472_v60 = vsel %vm471_vm4, %v469_v55, %v1814_v54  ;;  %v1842_v55 = vld [vmem:[%s2603_s5] sm:$0xff]   ;;  %v1843_v56 = vld [vmem:[%s2603_s5 + $0x8] sm:$0xff]  }
 0x593   :  { %v476_v61 = vsel %vm474_vm5, %v473_v59, %v1820_v57  ;;  %v475_v62 = vsel %vm474_vm5, %v472_v60, %v1819_v58  ;;  %1702 = vmatpush3.bf16.msra.mxu1 %v1842_v55  ;;  %v1844_v57 = vld [vmem:[%s2603_s5 + $0x10] sm:$0xff]   ;;  %v1845_v58 = vld [vmem:[%s2603_s5 + $0x18] sm:$0xff]   ;;  %v590_v59 = vsub.s32 4, %v2186_v7 }
 0x594   :  { %v477_v63 = vpack.c.bf16 %v476_v61, %v475_v62  ;;  %1703 = vmatprep.subr.bf16.mxu1 %v2069_v0 }
 0x595   :  { %v591_v60 = vrot.slane %v2192_v9, %v590_v59 }
 0x596   :  { %1690 = vmatmul.mubr.msk.bf16.vlgmr.msra.gmra.mrb[12].mxu0 %vm104_vm1, %v477_v63 }
 0x597   :  { %1697 = vmatprep.mubr.msk.bf16.mxu0 %vm2070_vm0, %v2069_v0  ;;  %1694 = vmatpush3.bf16.msra.mxu0 %v1840_v27 }
 0x598   :  { %1695 = vmatprep.subr.bf16.mxu0 %v2069_v0  ;;  %1704 = vmatpush3.bf16.msra.mxu1 %v1843_v56 }
 0x599   :  { %1705 = vmatprep.subr.bf16.mxu1 %v2069_v0 }
 0x59c   :  { %1706 = vmatpush3.bf16.msra.mxu1 %v1844_v57 }
 0x59d   :  { %1707 = vmatprep.subr.bf16.mxu1 %v2069_v0 }
 0x5a0   :  { %1708 = vmatpush3.bf16.msra.mxu1 %v1845_v58 }
 0x669   :  { %v535_v18 = vpop.f32.mrb[12].mxu0 }
 0x66a   :  { %v536_v2 = vadd.f32 %v535_v18, %v485_v1  ;;  %v1691_v5 = vpop.f32.mrb[13].mxu0 }
 0x66b   :  { %v538_v6 = vpop.f32.mrb[14].mxu0 }
 0x66c   :  { %v539_v10 = vadd.f32 %v538_v6, %v485_v1  ;;  %v1692_v11 = vpop.f32.mrb[15].mxu0  ;;  %v542_v12 = vadd.f32 %v536_v2, %v2178_v3 }
 0x66e   :  { %v544_v13 = vsel %vm104_vm1, %v542_v12, 0.0  ;;  %v543_v14 = vadd.f32 %v539_v10, %v2180_v4  ;;  %v1841_v4 = vld [vmem:[#allocation7 + $0x8] sm:$0xff]  }
 0x66f   :  { %545 = vadd.xlane.f32.xlu0 %v544_v13  ;;  %1696 = vmatpush3.bf16.msra.mxu0 %v1841_v4  ;;  %v677_v4 = vsub.s32 5, %v2186_v7 }
 0x670   :  { %v547_v15 = vsel %vm104_vm1, %v543_v14, 0.0  ;;  %1713 = vmatprep.subr.bf16.mxu0 %v2069_v0 }
 0x671   :  { %548 = vadd.xlane.f32.xlu1 %v547_v15 }
 0x6fc   :  { %v546_v16 = vpop.xlane.xlu0 %545 }
 0x6fd   :  { %v551_v19 = vmul.f32 0.03125, %v546_v16 }
 0x6fe   :  { %v549_v17 = vpop.xlane.xlu1 %548 }
 0x6ff   :  { %v553_v20 = vsub.f32 %v542_v12, %v551_v19  ;;  %v552_v22 = vmul.f32 0.03125, %v549_v17 }
 0x701   :  { %v554_v23 = vsub.f32 %v543_v14, %v552_v22  ;;  %v555_v24 = vmul.f32 %v553_v20, %v553_v20 }
 0x703   :  { %v557_v25 = vsel %vm104_vm1, %v555_v24, 0.0  ;;  %v556_v26 = vmul.f32 %v554_v23, %v554_v23 }
 0x704   :  { %558 = vadd.xlane.f32.xlu0 %v557_v25 }
 0x705   :  { %v560_v3 = vsel %vm104_vm1, %v556_v26, 0.0 }
 0x708   :  { %561 = vadd.xlane.f32.xlu0 %v560_v3 }
 0x791   :  { %v559_v28 = vpop.xlane.xlu0 %558 }
 0x792   :  { %v563_v30 = vmul.f32 0.03125, %v559_v28  ;;  %v678_v28 = vrot.slane %v2192_v9, %v677_v4 }
 0x794   :  { %v565_v31 = vadd.f32 1e-12, %v563_v30 }
 0x795   :  { %v562_v34 = vpop.xlane.xlu0 %561 }
 0x796   :  { %1888 = vrsqrt.f32 %v565_v31  ;;  %v564_v35 = vmul.f32 0.03125, %v562_v34 }
 0x798   :  { %v566_v37 = vadd.f32 1e-12, %v564_v35 }
 0x79a   :  { %1890 = vrsqrt.f32 %v566_v37 }
 0x7a0   :  { %v1889_v39 = vpop.eup %1888 }
 0x7a1   :  { %v569_v41 = vmul.f32 %v1889_v39, %v553_v20 }
 0x7a3   :  { %v575_v45 = vmul.f32 %v574_v40, %v569_v41 }
 0x7a4   :  { %v1891_v44 = vpop.eup %1890 }
 0x7a5   :  { %v570_v46 = vmul.f32 %v1891_v44, %v554_v23  ;;  %v581_v50 = vadd.f32 %v580_v48, %v575_v45 }
 0x7a7   :  { %v576_v49 = vmul.f32 %v574_v40, %v570_v46 }
 0x7a9   :  { %v582_v53 = vadd.f32 %v580_v48, %v576_v49 }
 0x7ab   :  { %v583_v54 = vpack.c.bf16 %v582_v53, %v581_v50 }
 0x7ad   :  { %1698 = vmatmul.mubr.msk.bf16.vlgmr.msra.gmra.mrb[16].mxu0 %vm104_vm1, %v583_v54 }
 0x7ae   :  { %1717 = vmatprep.mubr.msk.bf16.mxu0 %vm2070_vm0, %v2069_v0 }
 0x880   :  { %v641_v61 = vpop.f32.mrb[16].mxu0 }
 0x881   :  { %v642_v62 = vadd.f32 %v641_v61, %v591_v60  ;;  %v1699_v63 = vpop.f32.mrb[17].mxu0  ;;  %v1847_v61 = vld [vmem:[%s2600_s2 + $0x18] sm:$0xff]  }
 0x882   :  { %v644_v1 = vpop.f32.mrb[18].mxu0 }
 0x883   :  { %v648_v18 = vmul.f32 %v642_v62, %v642_v62  ;;  %v645_v2 = vadd.f32 %v644_v1, %v591_v60  ;;  %v1700_v5 = vpop.f32.mrb[19].mxu0 }
 0x885   :  { %v650_v6 = vmul.f32 %v648_v18, %v642_v62  ;;  %v649_v10 = vmul.f32 %v645_v2, %v645_v2 }
 0x887   :  { %v652_v11 = vmul.f32 0.044715, %v650_v6  ;;  %v651_v12 = vmul.f32 %v649_v10, %v645_v2  ;;  %v777_v6 = vsub.s32 6, %v2186_v7 }
 0x889   :  { %v654_v13 = vadd.f32 %v652_v11, %v642_v62  ;;  %v653_v14 = vmul.f32 0.044715, %v651_v12  ;;  %v778_v10 = vrot.slane %v2192_v9, %v777_v6  ;;  %v783_v11 = vsub.s32 7, %v2186_v7 }
 0x88b   :  { %v656_v15 = vmul.f32 0.7978846, %v654_v13  ;;  %v655_v16 = vadd.f32 %v653_v14, %v645_v2 }
 0x88d   :  { %1892 = vtanh.f32 %v656_v15  ;;  %v657_v19 = vmul.f32 0.7978846, %v655_v16 }
 0x88f   :  { %1894 = vtanh.f32 %v657_v19  ;;  %v784_v19 = vrot.slane %v2192_v9, %v783_v11 }
 0x897   :  { %v1893_v17 = vpop.eup %1892 }
 0x898   :  { %v660_v20 = vadd.f32 1.0, %v1893_v17 }
 0x899   :  { %v1895_v22 = vpop.eup %1894 }
 0x89a   :  { %v662_v23 = vmul.f32 0.5, %v660_v20  ;;  %v661_v24 = vadd.f32 1.0, %v1895_v22 }
 0x89c   :  { %v663_v25 = vmul.f32 0.5, %v661_v24  ;;  %v664_v26 = vmul.f32 %v662_v23, %v642_v62  ;;  %v2415_v24 = vld [vmem:[%s2604_s6 + $0x8] sm:$0xff] }
 0x89e   :  { %v665_v3 = vmul.f32 %v663_v25, %v645_v2  ;;  %v798_v25 = vrot.slane %v2415_v24, %v90_v8 }
 0x8a0   :  { %v666_v27 = vpack.c.bf16 %v665_v3, %v664_v26 }
 0x8a2   :  { %1710 = vmatmul.mubr.msk.bf16.vlgmr.msra.gmra.mrb[8].mxu1 %vm255_vm3, %v666_v27 }
 0x975   :  { %v740_v30 = vpop.f32.mrb[8].mxu1 }
 0x976   :  { %v741_v31 = vadd.f32 %v740_v30, %v678_v28  ;;  %v1711_v34 = vpop.f32.mrb[9].mxu1 }
 0x977   :  { %v743_v35 = vpop.f32.mrb[10].mxu1 }
 0x978   :  { %v744_v37 = vadd.f32 %v743_v35, %v678_v28  ;;  %v1712_v39 = vpop.f32.mrb[11].mxu1  ;;  %v747_v40 = vadd.f32 %v741_v31, %v581_v50 }
 0x97a   :  { %v749_v41 = vsel %vm104_vm1, %v747_v40, 0.0  ;;  %v748_v44 = vadd.f32 %v744_v37, %v582_v53  ;;  %v1846_v53 = vld [vmem:[%s2600_s2 + $0x10] sm:$0xff]  }
 0x97b   :  { %750 = vadd.xlane.f32.xlu1 %v749_v41  ;;  %1714 = vmatpush3.bf16.msra.mxu0 %v1846_v53 }
 0x97c   :  { %v752_v45 = vsel %vm104_vm1, %v748_v44, 0.0  ;;  %1715 = vmatprep.subr.bf16.mxu0 %v2069_v0 }
 0x97d   :  { %753 = vadd.xlane.f32.xlu0 %v752_v45 }
 0x97f   :  { %1716 = vmatpush3.bf16.msra.mxu0 %v1847_v61 }
 0xa08   :  { %v751_v46 = vpop.xlane.xlu1 %750 }
 0xa09   :  { %v755_v48 = vmul.f32 0.03125, %v751_v46 }
 0xa0a   :  { %v754_v49 = vpop.xlane.xlu0 %753 }
 0xa0b   :  { %v757_v54 = vsub.f32 %v747_v40, %v755_v48  ;;  %v756_v55 = vmul.f32 0.03125, %v754_v49 }
 0xa0d   :  { %v758_v56 = vsub.f32 %v748_v44, %v756_v55  ;;  %v759_v57 = vmul.f32 %v757_v54, %v757_v54 }
 0xa0f   :  { %v761_v58 = vsel %vm104_vm1, %v759_v57, 0.0  ;;  %v760_v60 = vmul.f32 %v758_v56, %v758_v56 }
 0xa10   :  { %762 = vadd.xlane.f32.xlu1 %v761_v58 }
 0xa11   :  { %v764_v50 = vsel %vm104_vm1, %v760_v60, 0.0 }
 0xa12   :  { %765 = vadd.xlane.f32.xlu0 %v764_v50 }
 0xa9d   :  { %v763_v62 = vpop.xlane.xlu1 %762 }
 0xa9e   :  { %v767_v63 = vmul.f32 0.03125, %v763_v62 }
 0xa9f   :  { %v766_v1 = vpop.xlane.xlu0 %765 }
 0xaa0   :  { %v769_v18 = vadd.f32 1e-12, %v767_v63  ;;  %v768_v2 = vmul.f32 0.03125, %v766_v1 }
 0xaa2   :  { %1896 = vrsqrt.f32 %v769_v18  ;;  %v770_v5 = vadd.f32 1e-12, %v768_v2 }
 0xaa4   :  { %1898 = vrsqrt.f32 %v770_v5 }
 0xaac   :  { %v1897_v12 = vpop.eup %1896 }
 0xaad   :  { %v773_v13 = vmul.f32 %v1897_v12, %v757_v54 }
 0xaae   :  { %v1899_v14 = vpop.eup %1898 }
 0xaaf   :  { %v779_v15 = vmul.f32 %v778_v10, %v773_v13  ;;  %v774_v16 = vmul.f32 %v1899_v14, %v758_v56 }
 0xab1   :  { %v780_v17 = vmul.f32 %v778_v10, %v774_v16  ;;  %v2405_v20 = vadd.f32 %v784_v19, %v779_v15 }
 0xab3   :  { %v2407_v22 = vadd.f32 %v784_v19, %v780_v17 }
 0xab5   :  { %v789_v23 = vpack.c.bf16 %v2407_v22, %v2405_v20 }
 0xab7   :  { %1718 = vmatmul.mubr.msk.bf16.vlgmr.msra.gmra.mrb[20].mxu0 %vm104_vm1, %v789_v23 }
 0xb8a   :  { %v848_v9 = vpop.f32.mrb[20].mxu0 }
 0xb8b   :  { %v1719_v26 = vpop.f32.mrb[21].mxu0  ;;  %v849_v27 = vadd.f32 %v848_v9, %v798_v25 }
 0xb8c   :  { %v851_v3 = vpop.f32.mrb[22].mxu0 }
 0xb8d   :  { %v852_v28 = vadd.f32 %v851_v3, %v798_v25  ;;  %v1720_v30 = vpop.f32.mrb[23].mxu0 }
 0xb8f   :  { %v2420_v31 = vpack.c.bf16 %v852_v28, %v849_v27 }
 0xb91   :  { %859 = vrot.lane.b32.xlu0 %v2420_v31, %s2074_s9  ;;  %857 = vrot.lane.b32.xlu1 %v2420_v31, %s2072_s29 }
 0xb92   :  { %1729 = vmatprep.mubr.msk.bf16.mxu1 %vm165_vm2, %v2420_v31 }
 0xb95   :  { %861 = vrot.lane.b32.xlu1 %v2420_v31, %s2071_s27 }
 0xb99   :  { %863 = vrot.lane.b32.xlu1 %v2420_v31, %s2073_s30 }
 0xc03   :  { %v2432_v8 = vpop.permute.xlu0 %859  ;;  %v858_v34 = vpop.permute.xlu1 %857 }
 0xc04   :  { %867 = vrot.lane.b32.xlu1 %v2432_v8, %s2073_s30  ;;  %865 = vrot.lane.b32.xlu0 %v858_v34, %s2073_s30 }
 0xc07   :  { %v2437_v35 = vpop.permute.xlu1 %861 }
 0xc08   :  { %869 = vrot.lane.b32.xlu0 %v2437_v35, %s2073_s30 }
 0xc0b   :  { %v864_v37 = vpop.permute.xlu1 %863 }
 0xc0c   :  { %v884_v39 = vsel %vm165_vm2, %v864_v37, 0  ;;  %1785 = vmatprep.subr.msk.bf16.mxu1 %vm165_vm2, %v864_v37 }
 0xc0d   :  { %1722 = vmatpush3.bf16.xpose.msra.mxu1 %v884_v39 }
 0xc76   :  { %v866_v40 = vpop.permute.xlu0 %865  ;;  %v868_v44 = vpop.permute.xlu1 %867 }
 0xc77   :  { %v887_v41 = vsel %vm165_vm2, %v866_v40, 0  ;;  %1786 = vmatprep.subr.msk.bf16.mxu1 %vm165_vm2, %v866_v40  ;;  %v890_v45 = vsel %vm165_vm2, %v868_v44, 0 }
 0xc78   :  { %1724 = vmatpush3.bf16.xpose.msra.mxu1 %v887_v41 }
 0xc79   :  { %1787 = vmatprep.subr.msk.bf16.mxu1 %vm165_vm2, %v868_v44 }
 0xc7a   :  { %v870_v46 = vpop.permute.xlu0 %869 }
 0xc7b   :  { %v893_v48 = vsel %vm165_vm2, %v870_v46, 0 }
 0xc80   :  { %1726 = vmatpush3.bf16.xpose.msra.mxu1 %v890_v45 }
 0xc81   :  { %1788 = vmatprep.subr.msk.bf16.mxu1 %vm165_vm2, %v870_v46 }
 0xc88   :  { %1728 = vmatpush3.bf16.xpose.msra.mxu1 %v893_v48 }
 0xc89   :  { %1769 = vmatprep.subr.bf16.mxu1 %v2069_v0 }
 0xc8f   :  { %1730 = vmatmul.mubr.msk.bf16.vlgmr.msra.gmra.mrb[12].mxu1 %vm165_vm2, %v858_v34 }
 0xc90   :  { %1733 = vmatprep.mubr.msk.bf16.mxu1 %vm165_vm2, %v2432_v8 }
 0xc97   :  { %1734 = vmatmul.mubr.msk.bf16.gmra.mrb[16].mxu1 %vm165_vm2, %v2437_v35 }
 0xc98   :  { %1777 = vmatprep.mubr.msk.bf16.mxu1 %vm2070_vm0, %v2069_v0 }
 0xd62   :  { %v1731_v49 = vpop.f32.mrb[12].mxu1 }
 0xd63   :  { %v929_v54 = vpop.f32.mrb[13].mxu1  ;;  %v938_v53 = vadd.f32 %v1731_v49, %v2257_v36 }
 0xd64   :  { %v930_v55 = vadd.f32 %v929_v54, %v2241_v29  ;;  %v1732_v56 = vpop.f32.mrb[14].mxu1 }
 0xd65   :  { %v932_v57 = vpop.f32.mrb[15].mxu1  ;;  %v941_v58 = vadd.f32 %v1732_v56, %v2246_v32  ;;  %v966_v32 = vsel %vm255_vm3, %v938_v53, -inf }
 0xd66   :  { %v933_v60 = vadd.f32 %v932_v57, %v2251_v33  ;;  %v960_v50 = vsel %vm255_vm3, %v930_v55, -inf }
 0xd67   :  { %961 = vmax.xlane.f32.xlu1 %v960_v50  ;;  %v969_v63 = vsel %vm255_vm3, %v941_v58, -inf }
 0xd68   :  { %v963_v61 = vsel %vm255_vm3, %v933_v60, -inf }
 0xd69   :  { %964 = vmax.xlane.f32.xlu0 %v963_v61 }
 0xd6a   :  { %v1735_v62 = vpop.f32.mrb[16].mxu1 }
 0xd6b   :  { %v945_v1 = vpop.f32.mrb[17].mxu1  ;;  %970 = vmax.xlane.f32.xlu1 %v969_v63  ;;  %v954_v5 = vadd.f32 %v1735_v62, %v2280_v51 }
 0xd6c   :  { %v946_v29 = vadd.f32 %v945_v1, %v2267_v43  ;;  %v1736_v18 = vpop.f32.mrb[18].mxu1 }
 0xd6d   :  { %v948_v2 = vpop.f32.mrb[19].mxu1  ;;  %967 = vmax.xlane.f32.xlu0 %v966_v32  ;;  %v957_v36 = vadd.f32 %v1736_v18, %v2285_v52  ;;  %v978_v13 = vsel %vm255_vm3, %v954_v5, -inf }
 0xd6e   :  { %v949_v33 = vadd.f32 %v948_v2, %v2273_v47  ;;  %v972_v10 = vsel %vm255_vm3, %v946_v29, -inf }
 0xd6f   :  { %v981_v43 = vsel %vm255_vm3, %v957_v36, -inf }
 0xd70   :  { %v975_v12 = vsel %vm255_vm3, %v949_v33, -inf }
 0xd71   :  { %973 = vmax.xlane.f32.xlu0 %v972_v10  ;;  %976 = vmax.xlane.f32.xlu1 %v975_v12 }
 0xd75   :  { %979 = vmax.xlane.f32.xlu0 %v978_v13  ;;  %982 = vmax.xlane.f32.xlu1 %v981_v43 }
 0xd86   :  { %1063 = vrot.lane.b32.xlu1 %v858_v34, %s2063_s15 }
 0xd8b   :  { %1061 = vrot.lane.b32.xlu0 %v2420_v31, %s2063_s15 }
 0xdf4   :  { %v962_v47 = vpop.xlane.xlu1 %961 }
 0xdf5   :  { %v984_v15 = vsub.f32 %v930_v55, %v962_v47 }
 0xdf6   :  { %v965_v51 = vpop.xlane.xlu0 %964 }
 0xdf7   :  { %v985_v52 = vsub.f32 %v933_v60, %v965_v51  ;;  %v992_v9 = vmul.f32 1.442695, %v984_v15 }
 0xdf8   :  { %v971_v14 = vpop.xlane.xlu1 %970 }
 0xdf9   :  { %v987_v16 = vsub.f32 %v941_v58, %v971_v14  ;;  %v994_v19 = vmul.f32 1.442695, %v985_v52 }
 0xdfa   :  { %v968_v17 = vpop.xlane.xlu0 %967 }
 0xdfb   :  { %v998_v23 = vmul.f32 1.442695, %v987_v16  ;;  %v986_v25 = vsub.f32 %v938_v53, %v968_v17 }
 0xdfd   :  { %1900 = vpow2.f32 %v998_v23  ;;  %v996_v26 = vmul.f32 1.442695, %v986_v25 }
 0xdfe   :  { %1902 = vpow2.f32 %v994_v19  ;;  %v974_v3 = vpop.xlane.xlu0 %973  ;;  %v977_v27 = vpop.xlane.xlu1 %976 }
 0xdff   :  { %1904 = vpow2.f32 %v996_v26  ;;  %v988_v28 = vsub.f32 %v946_v29, %v974_v3  ;;  %v989_v30 = vsub.f32 %v949_v33, %v977_v27 }
 0xe00   :  { %1906 = vpow2.f32 %v992_v9 }
 0xe01   :  { %v1000_v40 = vmul.f32 1.442695, %v988_v28  ;;  %v1002_v45 = vmul.f32 1.442695, %v989_v30 }
 0xe02   :  { %v980_v31 = vpop.xlane.xlu0 %979  ;;  %v983_v34 = vpop.xlane.xlu1 %982 }
 0xe03   :  { %v990_v37 = vsub.f32 %v954_v5, %v980_v31  ;;  %v991_v39 = vsub.f32 %v957_v36, %v983_v34 }
 0xe05   :  { %v1004_v41 = vmul.f32 1.442695, %v990_v37  ;;  %v1006_v44 = vmul.f32 1.442695, %v991_v39 }
 0xe06   :  { %v1062_v46 = vpop.permute.xlu0 %1061  ;;  %v1064_v54 = vpop.permute.xlu1 %1063 }
 0xe07   :  { %v1901_v48 = vpop.eup %1900  ;;  %1908 = vpow2.f32 %v1004_v41  ;;  %1737 = vmatprep.subr.bf16.mxu0 %v1062_v46  ;;  %v1849_v41 = vld [vmem:[#allocation5 + $0x18] sm:$0xff]  }
 0xe08   :  { %v1903_v49 = vpop.eup %1902  ;;  %1910 = vpow2.f32 %v1006_v44  ;;  %1738 = vmatpush3.bf16.msra.mxu0 %v1062_v46  ;;  %v1017_v55 = vsel %vm255_vm3, %v1901_v48, 0.0 }
 0xe09   :  { %v1905_v56 = vpop.eup %1904  ;;  %1912 = vpow2.f32 %v1000_v40  ;;  %1018 = vadd.xlane.f32.xlu1 %v1017_v55  ;;  %1739 = vmatprep.subr.bf16.mxu0 %v1064_v54  ;;  %v1011_v60 = vsel %vm255_vm3, %v1903_v49, 0.0  ;;  %v1848_v40 = vld [vmem:[#allocation5 + $0x10] sm:$0xff]  }
 0xe0a   :  { %1914 = vpow2.f32 %v1002_v45  ;;  %v1014_v57 = vsel %vm255_vm3, %v1905_v56, 0.0  ;;  %v1907_v58 = vpop.eup %1906 }
 0xe0b   :  { %1015 = vadd.xlane.f32.xlu0 %v1014_v57  ;;  %v1008_v50 = vsel %vm255_vm3, %v1907_v58, 0.0 }
 0xe0c   :  { %1740 = vmatpush3.bf16.msra.mxu0 %v1064_v54 }
 0xe0d   :  { %1012 = vadd.xlane.f32.xlu1 %v1011_v60 }
 0xe0f   :  { %1009 = vadd.xlane.f32.xlu0 %v1008_v50 }
 0xe11   :  { %v1909_v53 = vpop.eup %1908 }
 0xe12   :  { %v1911_v61 = vpop.eup %1910  ;;  %v1026_v62 = vsel %vm255_vm3, %v1909_v53, 0.0 }
 0xe13   :  { %v1913_v63 = vpop.eup %1912  ;;  %1027 = vadd.xlane.f32.xlu0 %v1026_v62  ;;  %v1029_v1 = vsel %vm255_vm3, %v1911_v61, 0.0 }
 0xe14   :  { %v1915_v29 = vpop.eup %1914  ;;  %1030 = vadd.xlane.f32.xlu1 %v1029_v1  ;;  %v1020_v18 = vsel %vm255_vm3, %v1913_v63, 0.0 }
 0xe15   :  { %v1023_v32 = vsel %vm255_vm3, %v1915_v29, 0.0 }
 0xe17   :  { %1021 = vadd.xlane.f32.xlu0 %v1020_v18 }
 0xe18   :  { %1024 = vadd.xlane.f32.xlu1 %v1023_v32 }
 0xe29   :  { %1065 = vrot.lane.b32.xlu1 %v2432_v8, %s2063_s15 }
 0xe2d   :  { %1067 = vrot.lane.b32.xlu0 %v2437_v35, %s2063_s15 }
 0xe96   :  { %v1019_v2 = vpop.xlane.xlu1 %1018 }
 0xe97   :  { %1916 = vrcp.f32 %v1019_v2 }
 0xe98   :  { %v1016_v33 = vpop.xlane.xlu0 %1015 }
 0xe99   :  { %1918 = vrcp.f32 %v1016_v33 }
 0xe9a   :  { %v1013_v5 = vpop.xlane.xlu1 %1012 }
 0xe9b   :  { %1920 = vrcp.f32 %v1013_v5 }
 0xe9c   :  { %v1010_v36 = vpop.xlane.xlu0 %1009 }
 0xe9d   :  { %1922 = vrcp.f32 %v1010_v36 }
 0xea0   :  { %v1028_v10 = vpop.xlane.xlu0 %1027 }
 0xea1   :  { %v1917_v12 = vpop.eup %1916  ;;  %1924 = vrcp.f32 %v1028_v10  ;;  %v1031_v13 = vpop.xlane.xlu1 %1030 }
 0xea2   :  { %v1043_v43 = vmul.f32 %v1917_v12, %v1901_v48  ;;  %1926 = vrcp.f32 %v1031_v13 }
 0xea3   :  { %v1919_v47 = vpop.eup %1918 }
 0xea4   :  { %1052 = vst.msk [vmem:[#allocation9 + $0x58] sm:$0xff] %vm255_vm3, %v1043_v43  ;;  %v1042_v8 = vmul.f32 %v1919_v47, %v1905_v56  ;;  %v1022_v51 = vpop.xlane.xlu0 %1021 }
 0xea5   :  { %v1921_v35 = vpop.eup %1920  ;;  %1928 = vrcp.f32 %v1022_v51  ;;  %v1025_v52 = vpop.xlane.xlu1 %1024 }
 0xea6   :  { %1051 = vst.msk [vmem:[#allocation9 + $0x50] sm:$0xff] %vm255_vm3, %v1042_v8  ;;  %1930 = vrcp.f32 %v1025_v52  ;;  %v1041_v14 = vmul.f32 %v1921_v35, %v1903_v49  ;;  %v1058_v30 = vpack.c.bf16 %v1043_v43, %v1042_v8  ;;  %v1189_v43 = vrot.slane %v2415_v24, %v484_v21 }
 0xea7   :  { %v1923_v15 = vpop.eup %1922 }
 0xea8   :  { %v1040_v16 = vmul.f32 %v1923_v15, %v1907_v58  ;;  %1050 = vst.msk [vmem:[#allocation9 + $0x48] sm:$0xff] %vm255_vm3, %v1041_v14  ;;  %v1068_v25 = vpop.permute.xlu0 %1067 }
 0xea9   :  { %v1066_v19 = vpop.permute.xlu1 %1065 }
 0xeaa   :  { %1741 = vmatprep.subr.bf16.mxu0 %v1066_v19  ;;  %1049 = vst.msk [vmem:[#allocation9 + $0x40] sm:$0xff] %vm255_vm3, %v1040_v16  ;;  %v1057_v17 = vpack.c.bf16 %v1041_v14, %v1040_v16 }
 0xeab   :  { %v1925_v23 = vpop.eup %1924  ;;  %1742 = vmatpush3.bf16.msra.mxu0 %v1066_v19 }
 0xeac   :  { %v1927_v9 = vpop.eup %1926  ;;  %1743 = vmatprep.subr.bf16.mxu0 %v1068_v25  ;;  %1745 = vmatprep.mubr.msk.bf16.mxu0 %vm255_vm3, %v1057_v17  ;;  %v1046_v26 = vmul.f32 %v1925_v23, %v1909_v53 }
 0xead   :  { %v1047_v3 = vmul.f32 %v1927_v9, %v1911_v61 }
 0xeae   :  { %1055 = vst.msk [vmem:[#allocation9 + $0x70] sm:$0xff] %vm255_vm3, %v1046_v26 }
 0xeaf   :  { %v1929_v27 = vpop.eup %1928  ;;  %1744 = vmatpush3.bf16.msra.mxu0 %v1068_v25  ;;  %1056 = vst.msk [vmem:[#allocation9 + $0x78] sm:$0xff] %vm255_vm3, %v1047_v3  ;;  %v1060_v39 = vpack.c.bf16 %v1047_v3, %v1046_v26 }
 0xeb0   :  { %v1931_v28 = vpop.eup %1930  ;;  %v1044_v31 = vmul.f32 %v1929_v27, %v1913_v63  ;;  %1753 = vmatprep.subr.bf16.mxu0 %v2069_v0 }
 0xeb1   :  { %v1045_v34 = vmul.f32 %v1931_v28, %v1915_v29 }
 0xeb2   :  { %1746 = vmatmul.mubr.msk.bf16.vlgmr.msra.gmra.mrb[24].mxu0 %vm255_vm3, %v1058_v30  ;;  %1053 = vst.msk [vmem:[#allocation9 + $0x60] sm:$0xff] %vm255_vm3, %v1044_v31 }
 0xeb3   :  { %1054 = vst.msk [vmem:[#allocation9 + $0x68] sm:$0xff] %vm255_vm3, %v1045_v34  ;;  %v1059_v37 = vpack.c.bf16 %v1045_v34, %v1044_v31  ;;  %1754 = vmatpush3.bf16.msra.mxu0 %v1848_v40  ;;  %v1850_v31 = vld [vmem:[#allocation7 + $0x10] sm:$0xff]  }
 0xeb4   :  { %1755 = vmatprep.subr.bf16.mxu0 %v2069_v0 }
 0xeb5   :  { %1749 = vmatprep.mubr.msk.bf16.mxu0 %vm255_vm3, %v1059_v37 }
 0xeb7   :  { %1756 = vmatpush3.bf16.msra.mxu0 %v1849_v41 }
 0xeb8   :  { %1761 = vmatprep.subr.bf16.mxu0 %v2069_v0 }
 0xeba   :  { %1750 = vmatmul.mubr.msk.bf16.gmra.mrb[28].mxu0 %vm255_vm3, %v1060_v39 }
 0xebb   :  { %1757 = vmatprep.mubr.msk.bf16.mxu0 %vm2070_vm0, %v2069_v0 }
 0xf85   :  { %v1747_v44 = vpop.f32.mrb[24].mxu0 }
 0xf86   :  { %v1119_v45 = vpop.f32.mrb[25].mxu0 }
 0xf87   :  { %v1748_v46 = vpop.f32.mrb[26].mxu0 }
 0xf88   :  { %v1821_v48 = vpack.i.bf16 %v1748_v46, %v1747_v44  ;;  %v1122_v49 = vpop.f32.mrb[27].mxu0  ;;  %v1277_v46 = vrot.slane %v2415_v24, %v573_v38  ;;  %v1853_v38 = vld [vmem:[%s2603_s5 + $0x28] sm:$0xff]  }
 0xf8a   :  { %1822 = vrot.lane.b32.xlu1 %v1821_v48, %s2067_s28 }
 0xf8d   :  { %v1751_v54 = vpop.f32.mrb[28].mxu0 }
 0xf8e   :  { %v1135_v55 = vpop.f32.mrb[29].mxu0 }
 0xf8f   :  { %v1752_v56 = vpop.f32.mrb[30].mxu0 }
 0xf90   :  { %v1831_v57 = vpack.i.bf16 %v1752_v56, %v1751_v54  ;;  %v1138_v58 = vpop.f32.mrb[31].mxu0  ;;  %v1283_v56 = vrot.slane %v2415_v24, %v579_v42  ;;  %v1854_v42 = vld [vmem:[%s2603_s5 + $0x30] sm:$0xff]  }
 0xf91   :  { %v1826_v60 = vpack.i.bf16 %v1138_v58, %v1135_v55 }
 0xf92   :  { %1832 = vrot.lane.b32.xlu1 %v1831_v57, %s2075_s1 }
 0xf93   :  { %1827 = vrot.lane.b32.xlu0 %v1826_v60, %s2076_s4 }
 0xffc   :  { %v1823_v50 = vpop.permute.xlu1 %1822 }
 0xffd   :  { %v1825_v53 = vunpack.i.h.bf16 %v1823_v50  ;;  %v1824_v61 = vunpack.i.l.bf16 %v1823_v50 }
 0xfff   :  { %v1174_v18 = vsel %vm165_vm2, %v1119_v45, %v1824_v61  ;;  %v1175_v32 = vsel %vm165_vm2, %v1122_v49, %v1825_v53  ;;  %v1852_v53 = vld [vmem:[%s2603_s5 + $0x20] sm:$0xff]   ;;  %v1855_v61 = vld [vmem:[%s2603_s5 + $0x38] sm:$0xff]   ;;  %s2077_s5 = smov [#allocation9]  }
0x1000   :  { %1770 = vmatpush3.bf16.msra.mxu1 %v1852_v53  ;;  %s1511_s25 = sshll.u32 %s2077_s5, 4  ;;  %s1512_s25 = int_to_ptr.vmem [resolvable:$true] %s1511_s25 }
0x1001   :  { %1771 = vmatprep.subr.bf16.mxu1 %v2069_v0  ;;  %s2010_s26 = scalar_lea.vmem %s1512_s25, 2048  ;;  %p2015_p11 = scmp.lt.s32.totalorder %s1512_s25, %s1512_s25 }
0x1002   :  { %p2011_p10 = scmp.ne.s32.totalorder %s1512_s25, %s2010_s26  ;;  %p2016_p12 = scmp.lt.s32.totalorder %s2010_s26, %s2010_s26 }
0x1004   :  { %v1833_v62 = vpop.permute.xlu1 %1832  ;;  %1772 = vmatpush3.bf16.msra.mxu1 %v1853_v38  ;;  %p2017_p13 = por %p2016_p12, %p2015_p11 }
0x1005   :  { %v1828_v63 = vpop.permute.xlu0 %1827  ;;  %v1835_v2 = vunpack.i.h.bf16 %v1833_v62  ;;  %v1834_v33 = vunpack.i.l.bf16 %v1833_v62  ;;  %1773 = vmatprep.subr.bf16.mxu1 %v2069_v0  ;;  %v1295_v62 = vrot.slane %v2415_v24, %v590_v59 }
0x1006   :  { %v1830_v1 = vunpack.i.h.bf16 %v1828_v63  ;;  %v1829_v29 = vunpack.i.l.bf16 %v1828_v63  ;;  %p2018_p0 = pnand %p2017_p13, %p2011_p10 }
0x1008   :  { %v1177_v5 = vsel %vm471_vm4, %v1175_v32, %v1830_v1  ;;  %v1176_v36 = vsel %vm471_vm4, %v1174_v18, %v1829_v29  ;;  %1774 = vmatpush3.bf16.msra.mxu1 %v1854_v42 }
0x1009   :  { %v1179_v10 = vsel %vm474_vm5, %v1177_v5, %v1835_v2  ;;  %v1178_v12 = vsel %vm474_vm5, %v1176_v36, %v1834_v33  ;;  %1775 = vmatprep.subr.bf16.mxu1 %v2069_v0 }
0x100a   :  { %v1180_v13 = vpack.c.bf16 %v1179_v10, %v1178_v12 }
0x100c   :  { %1758 = vmatmul.mubr.msk.bf16.vlgmr.msra.gmra.mrb[32].mxu0 %vm104_vm1, %v1180_v13  ;;  %1776 = vmatpush3.bf16.msra.mxu1 %v1855_v61 }
0x100d   :  { %1765 = vmatprep.mubr.msk.bf16.mxu0 %vm2070_vm0, %v2069_v0  ;;  %1762 = vmatpush3.bf16.msra.mxu0 %v1850_v31 }
0x100e   :  { %1763 = vmatprep.subr.bf16.mxu0 %v2069_v0 }
0x10df   :  { %v1239_v47 = vpop.f32.mrb[32].mxu0 }
0x10e0   :  { %v1240_v8 = vadd.f32 %v1239_v47, %v1189_v43  ;;  %v1759_v51 = vpop.f32.mrb[33].mxu0 }
0x10e1   :  { %v1242_v35 = vpop.f32.mrb[34].mxu0 }
0x10e2   :  { %v1243_v52 = vadd.f32 %v1242_v35, %v1189_v43  ;;  %v1760_v14 = vpop.f32.mrb[35].mxu0  ;;  %v1246_v15 = vadd.f32 %v1240_v8, %v2405_v20 }
0x10e4   :  { %v1248_v16 = vsel %vm104_vm1, %v1246_v15, 0.0  ;;  %v1247_v19 = vadd.f32 %v1243_v52, %v2407_v22  ;;  %v1851_v22 = vld [vmem:[#allocation7 + $0x18] sm:$0xff]  }
0x10e5   :  { %1249 = vadd.xlane.f32.xlu0 %v1248_v16  ;;  %1764 = vmatpush3.bf16.msra.mxu0 %v1851_v22 }
0x10e6   :  { %v1251_v17 = vsel %vm104_vm1, %v1247_v19, 0.0 }
0x10e7   :  { %1252 = vadd.xlane.f32.xlu1 %v1251_v17 }
0x1172   :  { %v1250_v23 = vpop.xlane.xlu0 %1249 }
0x1173   :  { %v1254_v25 = vmul.f32 0.03125, %v1250_v23  ;;  %v1383_v23 = vrot.slane %v2415_v24, %v677_v4 }
0x1174   :  { %v1253_v9 = vpop.xlane.xlu1 %1252 }
0x1175   :  { %v1256_v21 = vsub.f32 %v1246_v15, %v1254_v25  ;;  %v1255_v26 = vmul.f32 0.03125, %v1253_v9 }
0x1177   :  { %v1257_v3 = vsub.f32 %v1247_v19, %v1255_v26  ;;  %v1258_v27 = vmul.f32 %v1256_v21, %v1256_v21 }
0x1179   :  { %v1260_v28 = vsel %vm104_vm1, %v1258_v27, 0.0  ;;  %v1259_v30 = vmul.f32 %v1257_v3, %v1257_v3 }
0x117a   :  { %1261 = vadd.xlane.f32.xlu0 %v1260_v28 }
0x117b   :  { %v1263_v20 = vsel %vm104_vm1, %v1259_v30, 0.0 }
0x117e   :  { %1264 = vadd.xlane.f32.xlu0 %v1263_v20 }
0x1207   :  { %v1262_v34 = vpop.xlane.xlu0 %1261 }
0x1208   :  { %v1266_v37 = vmul.f32 0.03125, %v1262_v34 }
0x120a   :  { %v1268_v39 = vadd.f32 1e-12, %v1266_v37 }
0x120b   :  { %v1265_v40 = vpop.xlane.xlu0 %1264 }
0x120c   :  { %1932 = vrsqrt.f32 %v1268_v39  ;;  %v1267_v41 = vmul.f32 0.03125, %v1265_v40 }
0x120e   :  { %v1269_v44 = vadd.f32 1e-12, %v1267_v41 }
0x1210   :  { %1934 = vrsqrt.f32 %v1269_v44 }
0x1216   :  { %v1933_v45 = vpop.eup %1932 }
0x1217   :  { %v1272_v48 = vmul.f32 %v1933_v45, %v1256_v21 }
0x1219   :  { %v1278_v54 = vmul.f32 %v1277_v46, %v1272_v48 }
0x121a   :  { %v1935_v49 = vpop.eup %1934 }
0x121b   :  { %v1273_v55 = vmul.f32 %v1935_v49, %v1257_v3  ;;  %v1284_v58 = vadd.f32 %v1283_v56, %v1278_v54 }
0x121d   :  { %v1279_v57 = vmul.f32 %v1277_v46, %v1273_v55 }
0x121f   :  { %v1285_v60 = vadd.f32 %v1283_v56, %v1279_v57 }
0x1221   :  { %v1286_v50 = vpack.c.bf16 %v1285_v60, %v1284_v58 }
0x1223   :  { %1766 = vmatmul.mubr.msk.bf16.vlgmr.msra.gmra.mrb[36].mxu0 %vm104_vm1, %v1286_v50 }
0x12f6   :  { %v1345_v63 = vpop.f32.mrb[36].mxu0 }
0x12f7   :  { %v1346_v1 = vadd.f32 %v1345_v63, %v1295_v62  ;;  %v1767_v29 = vpop.f32.mrb[37].mxu0 }
0x12f8   :  { %v1348_v18 = vpop.f32.mrb[38].mxu0 }
0x12f9   :  { %v1352_v32 = vmul.f32 %v1346_v1, %v1346_v1  ;;  %v1349_v2 = vadd.f32 %v1348_v18, %v1295_v62  ;;  %v1768_v33 = vpop.f32.mrb[39].mxu0 }
0x12fb   :  { %v1354_v5 = vmul.f32 %v1352_v32, %v1346_v1  ;;  %v1353_v36 = vmul.f32 %v1349_v2, %v1349_v2 }
0x12fd   :  { %v1356_v10 = vmul.f32 0.044715, %v1354_v5  ;;  %v1355_v0 = vmul.f32 %v1353_v36, %v1349_v2 }
0x12ff   :  { %v1358_v12 = vadd.f32 %v1356_v10, %v1346_v1  ;;  %v1357_v13 = vmul.f32 0.044715, %v1355_v0 }
0x1301   :  { %v1360_v43 = vmul.f32 0.7978846, %v1358_v12  ;;  %v1359_v47 = vadd.f32 %v1357_v13, %v1349_v2 }
0x1303   :  { %1936 = vtanh.f32 %v1360_v43  ;;  %v1361_v8 = vmul.f32 0.7978846, %v1359_v47 }
0x1305   :  { %1938 = vtanh.f32 %v1361_v8 }
0x130d   :  { %v1937_v51 = vpop.eup %1936 }
0x130e   :  { %v1364_v59 = vadd.f32 1.0, %v1937_v51 }
0x130f   :  { %v1939_v35 = vpop.eup %1938 }
0x1310   :  { %v1366_v52 = vmul.f32 0.5, %v1364_v59  ;;  %v1365_v14 = vadd.f32 1.0, %v1939_v35 }
0x1312   :  { %v1367_v15 = vmul.f32 0.5, %v1365_v14  ;;  %v1368_v16 = vmul.f32 %v1366_v52, %v1346_v1 }
0x1314   :  { %v1369_v19 = vmul.f32 %v1367_v15, %v1349_v2 }
0x1316   :  { %v1370_v17 = vpack.c.bf16 %v1369_v19, %v1368_v16 }
0x1318   :  { %1778 = vmatmul.mubr.msk.bf16.vlgmr.msra.gmra.mrb[20].mxu1 %vm255_vm3, %v1370_v17 }
0x13eb   :  { %v1445_v25 = vpop.f32.mrb[20].mxu1 }
0x13ec   :  { %v1446_v9 = vadd.f32 %v1445_v25, %v1383_v23  ;;  %v1779_v21 = vpop.f32.mrb[21].mxu1 }
0x13ed   :  { %v1448_v26 = vpop.f32.mrb[22].mxu1 }
0x13ee   :  { %v1449_v3 = vadd.f32 %v1448_v26, %v1383_v23  ;;  %v1780_v27 = vpop.f32.mrb[23].mxu1  ;;  %v1452_v28 = vadd.f32 %v1446_v9, %v1284_v58 }
0x13f0   :  { %v1454_v30 = vsel %vm104_vm1, %v1452_v28, 0.0  ;;  %v1453_v20 = vadd.f32 %v1449_v3, %v1285_v60 }
0x13f1   :  { %1455 = vadd.xlane.f32.xlu1 %v1454_v30 }
0x13f2   :  { %v1457_v31 = vsel %vm104_vm1, %v1453_v20, 0.0 }
0x13f3   :  { %1458 = vadd.xlane.f32.xlu0 %v1457_v31 }
0x147e   :  { %v1456_v22 = vpop.xlane.xlu1 %1455 }
0x147f   :  { %v1460_v34 = vmul.f32 0.03125, %v1456_v22 }
0x1480   :  { %v1459_v37 = vpop.xlane.xlu0 %1458 }
0x1481   :  { %v1462_v39 = vsub.f32 %v1452_v28, %v1460_v34  ;;  %v1461_v40 = vmul.f32 0.03125, %v1459_v37 }
0x1483   :  { %v1463_v4 = vsub.f32 %v1453_v20, %v1461_v40  ;;  %v1464_v41 = vmul.f32 %v1462_v39, %v1462_v39 }
0x1485   :  { %v1466_v44 = vsel %vm104_vm1, %v1464_v41, 0.0  ;;  %v1465_v45 = vmul.f32 %v1463_v4, %v1463_v4 }
0x1486   :  { %1467 = vadd.xlane.f32.xlu1 %v1466_v44 }
0x1487   :  { %v1469_v46 = vsel %vm104_vm1, %v1465_v45, 0.0 }
0x1488   :  { %1470 = vadd.xlane.f32.xlu0 %v1469_v46 }
0x1489   :  { %2021 = shalt.err (!%p2018_p0)
}
0x148a   :  { %s2022_s16 = scalar_lea.hbm %s2606_s8, 2048 }
0x148b   :  { %p2023_p1 = scmp.ne.s32.totalorder %s2606_s8, %s2022_s16  ;;  %p2026_p2 = scmp.lt.u32.totalorder %s2022_s16, %s2606_s8 }
0x148d   :  { %p2028_p3 = pnand %p2026_p2, %p2023_p1 }
0x148f   :  { %2031 = shalt.err (!%p2028_p3)
}
0x1490   :  { %1517 = dma.vmem_to_hbm [thread:$0]  %s1512_s25, 2048, %s2606_s8, [#allocation10], %s2066_s3, %s2066_s3, %s2067_s28   ;;  %v1483_v58 = vrot.slane %v2415_v24, %v777_v6  ;;  %v1489_v53 = vrot.slane %v2415_v24, %v783_v11 }
0x1491   :  { %s2078_s8 = smov [#allocation8]  }
0x1492   :  { %s1499_s18 = sshll.u32 %s2078_s8, 4  ;;  %s1500_s18 = int_to_ptr.vmem [resolvable:$true] %s1499_s18 }
0x1493   :  { %s2032_s19 = scalar_lea.vmem %s1500_s18, 256  ;;  %p2037_p5 = scmp.lt.s32.totalorder %s1500_s18, %s1500_s18 }
0x1494   :  { %p2033_p4 = scmp.ne.s32.totalorder %s1500_s18, %s2032_s19  ;;  %p2038_p6 = scmp.lt.s32.totalorder %s2032_s19, %s2032_s19 }
0x1496   :  { %p2039_p7 = por %p2038_p6, %p2037_p5 }
0x1498   :  { %p2040_p8 = pnand %p2039_p7, %p2033_p4 }
0x1513   :  { %v1468_v48 = vpop.xlane.xlu1 %1467 }
0x1514   :  { %v1472_v49 = vmul.f32 0.03125, %v1468_v48 }
0x1515   :  { %v1471_v54 = vpop.xlane.xlu0 %1470 }
0x1516   :  { %v1474_v55 = vadd.f32 1e-12, %v1472_v49  ;;  %v1473_v56 = vmul.f32 0.03125, %v1471_v54 }
0x1518   :  { %1940 = vrsqrt.f32 %v1474_v55  ;;  %v1475_v57 = vadd.f32 1e-12, %v1473_v56 }
0x151a   :  { %1942 = vrsqrt.f32 %v1475_v57 }
0x1522   :  { %v1941_v60 = vpop.eup %1940 }
0x1523   :  { %v1478_v50 = vmul.f32 %v1941_v60, %v1462_v39 }
0x1524   :  { %v1943_v38 = vpop.eup %1942 }
0x1525   :  { %v1479_v42 = vmul.f32 %v1943_v38, %v1463_v4  ;;  %v1484_v61 = vmul.f32 %v1483_v58, %v1478_v50 }
0x1527   :  { %v1485_v62 = vmul.f32 %v1483_v58, %v1479_v42  ;;  %v1490_v63 = vadd.f32 %v1489_v53, %v1484_v61 }
0x1529   :  { %v1491_v1 = vadd.f32 %v1489_v53, %v1485_v62  ;;  %1492 = vst.msk [vmem:[#allocation8] sm:$0xff] %vm104_vm1, %v1490_v63 }
0x152b   :  { %1493 = vst.msk [vmem:[#allocation8 + $0x8] sm:$0xff] %vm104_vm1, %v1491_v1 }
0x152c   :  { %2043 = shalt.err (!%p2040_p8)
}
0x152d   :  { %s2044_s0 = scalar_lea.hbm %s2605_s7, 256 }
0x152e   :  { %p2045_p9 = scmp.ne.s32.totalorder %s2605_s7, %s2044_s0  ;;  %p2048_p10 = scmp.lt.u32.totalorder %s2044_s0, %s2605_s7 }
0x1530   :  { %p2050_p11 = pnand %p2048_p10, %p2045_p9 }
0x1532   :  { %2053 = shalt.err (!%p2050_p11)
}
0x1533   :  { %1505 = dma.vmem_to_hbm [thread:$0]  %s1500_s18, 256, %s2605_s7, [#allocation4], %s2066_s3, %s2066_s3, %s2067_s28  }
0x1534   :  { %2058 = dma.done.wait [#allocation4], 256  }
0x1535   :  { %2059 = vsyncadd [#allocation4], 4294967040 }
0x1536   :  { %2060 = dma.done.wait [#allocation10], 2048  }
0x1537   :  { %2061 = vsyncadd [#allocation10], 4294965248 }
0x1538   :  { %1524 = vsyncpa [#allocation3], 1 }
0x1539   :  { %1525 = vsyncpa [#allocation6], 1 }
0x153a   :  { %1526 = vsyncpa [#allocation4], 1 }
0x153b   :  { %1527 = vsyncpa [#allocation10], 1 }

</bundles_post_ra>
